<compile_context>
chip_gen: v7x
topology: tpu7x:2x2x1
jax: 0.10.0
libtpu: 0.0.40
codegen_flags: <defaults>
</compile_context>

<pallas_src>
import math
from functools import partial

import jax
import jax.numpy as jnp
from jax.experimental import pallas as pl
from jax.experimental.pallas import tpu as pltpu

GROUPS = 4          # resnet_block_groups
ATTN_HEADS = 4      # Attention defaults (lucidrains DDPM Unet)
ATTN_DIM_HEAD = 32


def _log2(n):
    assert n > 0 and (n & (n - 1)) == 0, f"{n} must be a power of two"
    return n.bit_length() - 1


# ----------------------------------------------------------------------------
# In-kernel helpers (operate on values already resident in VMEM / vregs)
# ----------------------------------------------------------------------------
def _silu(v):
    return v * jax.nn.sigmoid(v)


def _conv_taps(x, w_ref, H, W, K, P):
    """Implicit-GEMM KxK (stride 1) conv on channel-major activations.

    x      : (Cin, H*W) bf16, spatial flattened on the lane axis.
    w_ref  : (K*K, Cout, Cin) bf16 weights, tap-major (dy*K + dx).
    Returns (Cout, H*W) f32.
    """
    HW = H * W
    if K == 1:
        return jnp.dot(w_ref[0], x, preferred_element_type=jnp.float32)
    lw = _log2(W)
    src = jax.lax.broadcasted_iota(jnp.int32, (HW, HW), 0)   # source flat position
    dst = jax.lax.broadcasted_iota(jnp.int32, (HW, HW), 1)   # output flat position
    hd = dst >> lw
    wd = dst & (W - 1)
    Cout = w_ref.shape[1]
    acc = jnp.zeros((Cout, HW), jnp.float32)
    for dy in range(K):
        oy = dy - P
        for dx in range(K):
            ox = dx - P
            hs = hd + oy
            ws = wd + ox
            ok = ((hs >= 0) & (hs < H) & (ws >= 0) & (ws < W)
                  & (src == dst + (oy * W + ox)))
            s = jnp.where(ok, 1.0, 0.0).astype(x.dtype)       # (HW, HW) 0/1 select
            xs = jnp.dot(x, s, preferred_element_type=jnp.float32).astype(x.dtype)
            acc = acc + jnp.dot(w_ref[dy * K + dx], xs,
                                preferred_element_type=jnp.float32)
    return acc


def _group_norm(h, gamma, beta, groups):
    """GroupNorm (eps=1e-5, biased var) on (C, HW) f32; gamma/beta: (C, 1)."""
    C, HW = h.shape
    Cg = C // groups
    n = float(Cg * HW)
    lcg = _log2(Cg)
    # block-diagonal group-averaging matrix built in-kernel (keeps the
    # cross-channel reduction on the MXU; no unaligned sublane slicing)
    ri = jax.lax.broadcasted_iota(jnp.int32, (C, C), 0) >> lcg
    ci = jax.lax.broadcasted_iota(jnp.int32, (C, C), 1) >> lcg
    A = jnp.where(ri == ci, 1.0 / n, 0.0)
    mean = jnp.dot(A, jnp.sum(h, axis=1, keepdims=True),
                   preferred_element_type=jnp.float32)         # (C, 1)
    d = h - mean
    var = jnp.dot(A, jnp.sum(d * d, axis=1, keepdims=True),
                  preferred_element_type=jnp.float32)          # (C, 1)
    return d * jax.lax.rsqrt(var + 1e-5) * gamma + beta


# ----------------------------------------------------------------------------
# Pallas kernels
# ----------------------------------------------------------------------------
def _conv_kernel(x_ref, w_ref, b_ref, o_ref, *, H, W, K, P):
    out = _conv_taps(x_ref[0], w_ref, H, W, K, P) + b_ref[...]
    o_ref[0] = out.astype(o_ref.dtype)


def _resnet_kernel(x_ref, t_ref, mw_ref, mb_ref,
                   w1_ref, b1_ref, g1_ref, a1_ref,
                   w2_ref, b2_ref, g2_ref, a2_ref,
                   rw_ref, rb_ref, o_ref, *, H, W, groups, has_res):
    """Whole ResnetBlock fused (one batch row per grid step)."""
    x = x_ref[0]                                        # (Cin, HW) bf16
    Cout = o_ref.shape[1]
    # time conditioning head: (scale || shift) = Linear(SiLU(t)), channel column
    t = t_ref[0]                                        # (Td, 1) f32
    th = _silu(t).astype(jnp.bfloat16)
    ss = jnp.dot(mw_ref[...], th, preferred_element_type=jnp.float32) + mb_ref[...]
    scale = ss[:Cout, :]
    shift = ss[Cout:, :]
    # block 1: conv3x3 -> GN -> *(scale+1)+shift -> SiLU
    h = _conv_taps(x, w1_ref, H, W, 3, 1) + b1_ref[...]
    h = _group_norm(h, g1_ref[...], a1_ref[...], groups)
    h = _silu(h * (scale + 1.0) + shift)
    # block 2: conv3x3 -> GN -> SiLU
    h = _conv_taps(h.astype(jnp.bfloat16), w2_ref, H, W, 3, 1) + b2_ref[...]
    h = _group_norm(h, g2_ref[...], a2_ref[...], groups)
    h = _silu(h)
    # residual (1x1 conv or identity)
    if has_res:
        res = jnp.dot(rw_ref[...], x, preferred_element_type=jnp.float32) + rb_ref[...]
    else:
        res = x.astype(jnp.float32)
    o_ref[0] = (h + res).astype(o_ref.dtype)


def _attention_kernel(x_ref, wqkv_ref, wout_ref, bout_ref, o_ref, *, heads, dh, scale):
    """Fused to_qkv (no bias) -> multi-head softmax attention -> to_out -> +x."""
    x = x_ref[0]                                        # (C, N) bf16
    qkv = jnp.dot(wqkv_ref[...], x, preferred_element_type=jnp.float32)  # (3*hid, N)
    hid = heads * dh
    acc = x.astype(jnp.float32) + bout_ref[...]         # residual + to_out bias
    for h in range(heads):
        q = qkv[h * dh:(h + 1) * dh, :]                 # (dh, N) f32
        k = qkv[hid + h * dh:hid + (h + 1) * dh, :]
        v = qkv[2 * hid + h * dh:2 * hid + (h + 1) * dh, :]
        # sim[m, n] = <k[:, m], q[:, n]>  (keys on sublanes, queries on lanes)
        sim = jnp.dot(k.T, q, preferred_element_type=jnp.float32) * scale
        sim = sim - jnp.max(sim, axis=0, keepdims=True)
        e = jnp.exp(sim)
        p = (e / jnp.sum(e, axis=0, keepdims=True)).astype(jnp.bfloat16)
        out_h = jnp.dot(v.astype(jnp.bfloat16), p,
                        preferred_element_type=jnp.float32)              # (dh, N)
        acc = acc + jnp.dot(wout_ref[h], out_h.astype(jnp.bfloat16),
                            preferred_element_type=jnp.float32)          # (C, N)
    o_ref[0] = acc.astype(o_ref.dtype)


# ----------------------------------------------------------------------------
# pallas_call wrappers
# ----------------------------------------------------------------------------
def _full(shape):
    z = (0,) * len(shape)
    return pl.BlockSpec(tuple(shape), lambda i, _z=z: _z)


def _per_batch(shape):
    blk = (1,) + tuple(shape[1:])
    rest = (0,) * (len(shape) - 1)
    return pl.BlockSpec(blk, lambda i, _r=rest: (i,) + _r)


_PARAMS = pltpu.CompilerParams(dimension_semantics=("parallel",))


def conv2d(x, w, b, *, H, W, padding, out_dtype=jnp.bfloat16):
    """x: (B, Cin, H*W) bf16; w: (Cout, Cin, K, K); b: (Cout,); stride 1."""
    B, Cin, HW = x.shape
    Cout, _, K, _ = w.shape
    wt = jnp.transpose(w, (2, 3, 0, 1)).reshape(K * K, Cout, Cin).astype(jnp.bfloat16)
    bc = b.astype(jnp.float32).reshape(Cout, 1)
    return pl.pallas_call(
        partial(_conv_kernel, H=H, W=W, K=K, P=padding),
        out_shape=jax.ShapeDtypeStruct((B, Cout, HW), out_dtype),
        grid=(B,),
        in_specs=[_per_batch(x.shape), _full(wt.shape), _full(bc.shape)],
        out_specs=_per_batch((B, Cout, HW)),
        compiler_params=_PARAMS,
    )(x, wt, bc)


def resnet_block(x, tcol, p, *, H, W, groups=GROUPS):
    B, Cin, HW = x.shape
    w1 = p['block1']['proj']['w']
    Cout = w1.shape[0]
    col = lambda v: v.astype(jnp.float32).reshape(-1, 1)
    w1t = jnp.transpose(w1, (2, 3, 0, 1)).reshape(9, Cout, Cin).astype(jnp.bfloat16)
    w2t = jnp.transpose(p['block2']['proj']['w'],
                        (2, 3, 0, 1)).reshape(9, Cout, Cout).astype(jnp.bfloat16)
    mw = p['mlp']['w'].astype(jnp.bfloat16)                     # (2*Cout, Td)
    mb = col(p['mlp']['b'])
    b1, g1, a1 = col(p['block1']['proj']['b']), col(p['block1']['gn']['w']), col(p['block1']['gn']['b'])
    b2, g2, a2 = col(p['block2']['proj']['b']), col(p['block2']['gn']['w']), col(p['block2']['gn']['b'])
    has_res = p['res_conv'] is not None
    if has_res:
        rw = p['res_conv']['w'].reshape(Cout, Cin).astype(jnp.bfloat16)
        rb = col(p['res_conv']['b'])
    else:
        rw = jnp.zeros((Cout, Cin), jnp.bfloat16)
        rb = jnp.zeros((Cout, 1), jnp.float32)
    args = (x, tcol, mw, mb, w1t, b1, g1, a1, w2t, b2, g2, a2, rw, rb)
    in_specs = [_per_batch(x.shape), _per_batch(tcol.shape)] + \
               [_full(a.shape) for a in args[2:]]
    return pl.pallas_call(
        partial(_resnet_kernel, H=H, W=W, groups=groups, has_res=has_res),
        out_shape=jax.ShapeDtypeStruct((B, Cout, HW), jnp.bfloat16),
        grid=(B,),
        in_specs=in_specs,
        out_specs=_per_batch((B, Cout, HW)),
        compiler_params=_PARAMS,
    )(*args)


def attention(x, p, *, heads=ATTN_HEADS, dh=ATTN_DIM_HEAD):
    B, C, HW = x.shape
    hid = heads * dh
    wqkv = p['to_qkv']['w'].reshape(3 * hid, C).astype(jnp.bfloat16)
    wout = p['to_out']['w'].reshape(C, heads, dh).transpose(1, 0, 2).astype(jnp.bfloat16)
    bout = p['to_out']['b'].astype(jnp.float32).reshape(C, 1)
    return pl.pallas_call(
        partial(_attention_kernel, heads=heads, dh=dh, scale=dh ** -0.5),
        out_shape=jax.ShapeDtypeStruct((B, C, HW), jnp.bfloat16),
        grid=(B,),
        in_specs=[_per_batch(x.shape), _full(wqkv.shape), _full(wout.shape),
                  _full(bout.shape)],
        out_specs=_per_batch((B, C, HW)),
        compiler_params=_PARAMS,
    )(x, wqkv, wout, bout)


# ----------------------------------------------------------------------------
# XLA glue (tiny reshapes / resampling between kernels)
# ----------------------------------------------------------------------------
def sinusoidal_emb(time, dim):
    half = dim // 2
    emb = math.log(10000) / (half - 1)
    freqs = jnp.exp(jnp.arange(half, dtype=jnp.float32) * -emb)
    args = time.astype(jnp.float32)[:, None] * freqs[None, :]
    return jnp.concatenate([jnp.sin(args), jnp.cos(args)], axis=-1)


def downsample_rearrange(x, H, W):      # 'b c (h p1) (w p2) -> b (c p1 p2) h w'
    B, C, _ = x.shape
    x = x.reshape(B, C, H // 2, 2, W // 2, 2).transpose(0, 1, 3, 5, 2, 4)
    return x.reshape(B, 4 * C, (H // 2) * (W // 2))


def upsample_nearest(x, H, W):
    B, C, _ = x.shape
    x = x.reshape(B, C, H, W)
    x = jnp.repeat(jnp.repeat(x, 2, axis=2), 2, axis=3)
    return x.reshape(B, C, 4 * H * W)


# ----------------------------------------------------------------------------
# Unet forward (time_cond=None path)
# ----------------------------------------------------------------------------
def unet_forward(params, x, time):
    B, CH, H, W = x.shape
    dim = params['time_lin1']['w'].shape[1]
    time_dim = params['time_lin1']['w'].shape[0]

    # Time-embedding MLP is (B, 32): kept in XLA.  The per-block SiLU+Linear
    # head that produces scale/shift is fused into every resnet kernel.
    t = sinusoidal_emb(time, dim)
    t = t @ params['time_lin1']['w'].T + params['time_lin1']['b']
    t = jax.nn.gelu(t, approximate=False)
    t = t @ params['time_lin2']['w'].T + params['time_lin2']['b']
    tcol = t.reshape(B, time_dim, 1).astype(jnp.float32)

    xf = x.reshape(B, CH, H * W).astype(jnp.bfloat16)
    xf = conv2d(xf, params['init_conv']['w'], params['init_conv']['b'],
                H=H, W=W, padding=3)
    r = xf
    skips = []
    n_levels = len(params['downs'])

    for ind, lp in enumerate(params['downs']):
        is_last = ind == n_levels - 1
        xf = resnet_block(xf, tcol, lp['block1'], H=H, W=W)
        skips.append(xf)
        xf = resnet_block(xf, tcol, lp['block2'], H=H, W=W)
        xf = attention(xf, lp['attn'])
        skips.append(xf)
        if not is_last:
            xf = downsample_rearrange(xf, H, W)
            H, W = H // 2, W // 2
            xf = conv2d(xf, lp['down']['w'], lp['down']['b'], H=H, W=W, padding=0)
        else:
            xf = conv2d(xf, lp['down']['w'], lp['down']['b'], H=H, W=W, padding=1)

    xf = resnet_block(xf, tcol, params['mid1'], H=H, W=W)
    xf = attention(xf, params['mid_attn'])
    xf = resnet_block(xf, tcol, params['mid2'], H=H, W=W)

    for ind, lp in enumerate(params['ups']):
        is_last = ind == n_levels - 1
        xf = jnp.concatenate([xf, skips.pop()], axis=1)
        xf = resnet_block(xf, tcol, lp['block1'], H=H, W=W)
        xf = jnp.concatenate([xf, skips.pop()], axis=1)
        xf = resnet_block(xf, tcol, lp['block2'], H=H, W=W)
        xf = attention(xf, lp['attn'])
        if not is_last:
            xf = upsample_nearest(xf, H, W)
            H, W = 2 * H, 2 * W
        xf = conv2d(xf, lp['up']['w'], lp['up']['b'], H=H, W=W, padding=1)

    xf = jnp.concatenate([xf, r], axis=1)
    xf = resnet_block(xf, tcol, params['final_res'], H=H, W=W)
    out = conv2d(xf, params['final_conv']['w'], params['final_conv']['b'],
                 H=H, W=W, padding=0, out_dtype=jnp.float32)
    return out.reshape(B, -1, H, W)


# ----------------------------------------------------------------------------
# Deterministic parameter init (PyTorch default fan-in uniform shapes)
# ----------------------------------------------------------------------------
def unet_init(key, dim=8, channels=3, dim_mults=(1, 2, 4, 8), out_dim=None):
    counter = [0]

    def nk():
        counter[0] += 1
        return jax.random.fold_in(key, counter[0])

    def conv_p(cout, cin, k, bias=True):
        fan_in = cin * k * k
        bound = 1.0 / math.sqrt(fan_in)
        w = jax.random.uniform(nk(), (cout, cin, k, k), jnp.float32, -bound, bound)
        b = (jax.random.uniform(nk(), (cout,), jnp.float32, -bound, bound)
             if bias else None)
        return {'w': w, 'b': b}

    def lin_p(out_f, in_f):
        bound = 1.0 / math.sqrt(in_f)
        return {'w': jax.random.uniform(nk(), (out_f, in_f), jnp.float32, -bound, bound),
                'b': jax.random.uniform(nk(), (out_f,), jnp.float32, -bound, bound)}

    def gn_p(c):
        return {'w': jnp.ones((c,), jnp.float32), 'b': jnp.zeros((c,), jnp.float32)}

    def block_p(din, dout):
        return {'proj': conv_p(dout, din, 3), 'gn': gn_p(dout)}

    def resnet_p(din, dout, time_dim):
        return {'mlp': lin_p(dout * 2, time_dim),
                'block1': block_p(din, dout),
                'block2': block_p(dout, dout),
                'res_conv': conv_p(dout, din, 1) if din != dout else None}

    def attn_p(d):
        hidden = ATTN_HEADS * ATTN_DIM_HEAD
        return {'to_qkv': conv_p(hidden * 3, d, 1, bias=False),
                'to_out': conv_p(d, hidden, 1)}

    init_dim = dim
    time_dim = dim * 4
    dims = [init_dim] + [dim * m for m in dim_mults]
    in_out = list(zip(dims[:-1], dims[1:]))
    n = len(in_out)

    params = {
        'init_conv': conv_p(init_dim, channels, 7),
        'time_lin1': lin_p(time_dim, dim),
        'time_lin2': lin_p(time_dim, time_dim),
    }
    downs = []
    for ind, (din, dout) in enumerate(in_out):
        is_last = ind == n - 1
        downs.append({'block1': resnet_p(din, din, time_dim),
                      'block2': resnet_p(din, din, time_dim),
                      'attn': attn_p(din),
                      'down': (conv_p(dout, din * 4, 1) if not is_last
                               else conv_p(dout, din, 3))})
    params['downs'] = downs

    mid = dims[-1]
    params['mid1'] = resnet_p(mid, mid, time_dim)
    params['mid_attn'] = attn_p(mid)
    params['mid2'] = resnet_p(mid, mid, time_dim)

    ups = []
    for ind, (din, dout) in enumerate(reversed(in_out)):
        ups.append({'block1': resnet_p(dout + din, dout, time_dim),
                    'block2': resnet_p(dout + din, dout, time_dim),
                    'attn': attn_p(dout),
                    'up': conv_p(din, dout, 3)})
    params['ups'] = ups

    params['final_res'] = resnet_p(dim * 2, dim, time_dim)
    params['final_conv'] = conv_p(out_dim if out_dim is not None else channels, dim, 1)
    return params


# ----------------------------------------------------------------------------
if __name__ == "__main__":
    B, CH, HW_IN, DIM = 2, 3, 16, 8

    root = jax.random.PRNGKey(0)
    k_params, k_x = jax.random.split(root)

    # Sanity-check the implicit-GEMM conv kernel against XLA's conv (same bf16 inputs).
    kx = jax.random.normal(jax.random.fold_in(root, 99), (B, 8, HW_IN, HW_IN), jnp.float32)
    kw = jax.random.normal(jax.random.fold_in(root, 98), (16, 8, 3, 3), jnp.float32) * 0.1
    kb = jax.random.normal(jax.random.fold_in(root, 97), (16,), jnp.float32)
    got = conv2d(kx.reshape(B, 8, -1).astype(jnp.bfloat16), kw, kb,
                 H=HW_IN, W=HW_IN, padding=1, out_dtype=jnp.float32)
    ref = jax.lax.conv_general_dilated(
        kx.astype(jnp.bfloat16).astype(jnp.float32),
        kw.astype(jnp.bfloat16).astype(jnp.float32),
        (1, 1), ((1, 1), (1, 1)),
        dimension_numbers=('NCHW', 'OIHW', 'NCHW')) + kb[None, :, None, None]
    assert jnp.allclose(got.reshape(ref.shape), ref, atol=1e-2, rtol=1e-2), \
        float(jnp.max(jnp.abs(got.reshape(ref.shape) - ref)))

    params = unet_init(k_params, dim=DIM, channels=CH, dim_mults=(1, 2, 4, 8))
    x = jax.random.normal(k_x, (B, CH, HW_IN, HW_IN), jnp.float32)
    time = jnp.array([3.0, 7.0], jnp.float32)

    fwd = jax.jit(unet_forward)
    out = fwd(params, x, time)
    out = jax.block_until_ready(out)

    assert out.shape == (B, CH, HW_IN, HW_IN), out.shape
    assert out.dtype == jnp.float32
    assert bool(jnp.all(jnp.isfinite(out)))
    print("KERNEL_OK")
</pallas_src>

<mosaic_0001>
module attributes {stable_mosaic.version = 11 : i64} {
  func.func @_conv_kernel(%arg0: i32, %arg1: memref<1x8x256xbf16, #tpu.memory_space<vmem>>, %arg2: memref<9x16x8xbf16, #tpu.memory_space<vmem>>, %arg3: memref<16x1xf32, #tpu.memory_space<vmem>>, %arg4: memref<1x16x256xf32, #tpu.memory_space<vmem>>) attributes {dimension_semantics = [#tpu.dimension_semantics<parallel>], iteration_bounds = array<i64: 2>, scalar_prefetch = 0 : i64, scratch_operands = 0 : i64, tpu.core_type = #tpu.core_type<tc>, window_params = [{transform_indices = @transform_0, window_bounds = array<i64: 1, 8, 256>}, {pipeline_mode = #tpu.pipeline_mode<synchronous>, transform_indices = @transform_1, window_bounds = array<i64: 9, 16, 8>}, {pipeline_mode = #tpu.pipeline_mode<synchronous>, transform_indices = @transform_2, window_bounds = array<i64: 16, 1>}, {transform_indices = @transform_3, window_bounds = array<i64: 1, 16, 256>}]} {
    %c0 = arith.constant 0 : index
    %c0_0 = arith.constant 0 : index
    %c0_1 = arith.constant 0 : index
    %0 = vector.load %arg1[%c0, %c0_0, %c0_1] : memref<1x8x256xbf16, #tpu.memory_space<vmem>>, vector<1x8x256xbf16>
    %1 = vector.shape_cast %0 : vector<1x8x256xbf16> to vector<8x256xbf16>
    %2 = tpu.iota {dimensions = array<i32: 0>} : vector<256x256xi32>
    %3 = tpu.iota {dimensions = array<i32: 1>} : vector<256x256xi32>
    %c4_i32 = arith.constant 4 : i32
    %4 = vector.broadcast %c4_i32 : i32 to vector<256x256xi32>
    %5 = arith.shrsi %3, %4 : vector<256x256xi32>
    %c15_i32 = arith.constant 15 : i32
    %6 = vector.broadcast %c15_i32 : i32 to vector<256x256xi32>
    %7 = arith.andi %3, %6 : vector<256x256xi32>
    %cst = arith.constant 0.000000e+00 : f32
    %8 = vector.broadcast %cst : f32 to vector<16x256xf32>
    %c-1_i32 = arith.constant -1 : i32
    %9 = vector.broadcast %c-1_i32 : i32 to vector<256x256xi32>
    %10 = arith.addi %5, %9 : vector<256x256xi32>
    %c-1_i32_2 = arith.constant -1 : i32
    %11 = vector.broadcast %c-1_i32_2 : i32 to vector<256x256xi32>
    %12 = arith.addi %7, %11 : vector<256x256xi32>
    %c0_i32 = arith.constant 0 : i32
    %13 = vector.broadcast %c0_i32 : i32 to vector<256x256xi32>
    %14 = arith.cmpi sge, %10, %13 : vector<256x256xi32>
    %c16_i32 = arith.constant 16 : i32
    %15 = vector.broadcast %c16_i32 : i32 to vector<256x256xi32>
    %16 = arith.cmpi slt, %10, %15 : vector<256x256xi32>
    %17 = arith.andi %14, %16 : vector<256x256xi1>
    %c0_i32_3 = arith.constant 0 : i32
    %18 = vector.broadcast %c0_i32_3 : i32 to vector<256x256xi32>
    %19 = arith.cmpi sge, %12, %18 : vector<256x256xi32>
    %20 = arith.andi %17, %19 : vector<256x256xi1>
    %c16_i32_4 = arith.constant 16 : i32
    %21 = vector.broadcast %c16_i32_4 : i32 to vector<256x256xi32>
    %22 = arith.cmpi slt, %12, %21 : vector<256x256xi32>
    %23 = arith.andi %20, %22 : vector<256x256xi1>
    %c-17_i32 = arith.constant -17 : i32
    %24 = vector.broadcast %c-17_i32 : i32 to vector<256x256xi32>
    %25 = arith.addi %3, %24 : vector<256x256xi32>
    %26 = arith.cmpi eq, %2, %25 : vector<256x256xi32>
    %27 = arith.andi %23, %26 : vector<256x256xi1>
    %cst_5 = arith.constant 1.000000e+00 : f32
    %cst_6 = arith.constant 0.000000e+00 : f32
    %28 = vector.broadcast %cst_5 : f32 to vector<256x256xf32>
    %29 = vector.broadcast %cst_6 : f32 to vector<256x256xf32>
    %30 = arith.select %27, %28, %29 : vector<256x256xi1>, vector<256x256xf32>
    %31 = arith.truncf %30 : vector<256x256xf32> to vector<256x256xbf16>
    %cst_7 = arith.constant dense<0.000000e+00> : vector<8x256xf32>
    %32 = tpu.matmul %1, %31, %cst_7 {dimension_numbers = #tpu.dot_dimension_numbers<[1], [0], [0], [1], [0, 0, 1, 1], [], []>} : vector<8x256xbf16>, vector<256x256xbf16>, vector<8x256xf32> -> vector<8x256xf32>
    %33 = arith.truncf %32 : vector<8x256xf32> to vector<8x256xbf16>
    %c0_8 = arith.constant 0 : index
    %c0_9 = arith.constant 0 : index
    %c0_10 = arith.constant 0 : index
    %34 = vector.load %arg2[%c0_8, %c0_9, %c0_10] : memref<9x16x8xbf16, #tpu.memory_space<vmem>>, vector<1x16x8xbf16>
    %35 = vector.shape_cast %34 : vector<1x16x8xbf16> to vector<16x8xbf16>
    %cst_11 = arith.constant dense<0.000000e+00> : vector<16x256xf32>
    %36 = tpu.matmul %35, %33, %cst_11 {dimension_numbers = #tpu.dot_dimension_numbers<[1], [0], [0], [1], [0, 0, 1, 1], [], []>} : vector<16x8xbf16>, vector<8x256xbf16>, vector<16x256xf32> -> vector<16x256xf32>
    %37 = arith.addf %8, %36 : vector<16x256xf32>
    %c-1_i32_12 = arith.constant -1 : i32
    %38 = vector.broadcast %c-1_i32_12 : i32 to vector<256x256xi32>
    %39 = arith.addi %5, %38 : vector<256x256xi32>
    %c0_i32_13 = arith.constant 0 : i32
    %40 = vector.broadcast %c0_i32_13 : i32 to vector<256x256xi32>
    %41 = arith.addi %7, %40 : vector<256x256xi32>
    %c0_i32_14 = arith.constant 0 : i32
    %42 = vector.broadcast %c0_i32_14 : i32 to vector<256x256xi32>
    %43 = arith.cmpi sge, %39, %42 : vector<256x256xi32>
    %c16_i32_15 = arith.constant 16 : i32
    %44 = vector.broadcast %c16_i32_15 : i32 to vector<256x256xi32>
    %45 = arith.cmpi slt, %39, %44 : vector<256x256xi32>
    %46 = arith.andi %43, %45 : vector<256x256xi1>
    %c0_i32_16 = arith.constant 0 : i32
    %47 = vector.broadcast %c0_i32_16 : i32 to vector<256x256xi32>
    %48 = arith.cmpi sge, %41, %47 : vector<256x256xi32>
    %49 = arith.andi %46, %48 : vector<256x256xi1>
    %c16_i32_17 = arith.constant 16 : i32
    %50 = vector.broadcast %c16_i32_17 : i32 to vector<256x256xi32>
    %51 = arith.cmpi slt, %41, %50 : vector<256x256xi32>
    %52 = arith.andi %49, %51 : vector<256x256xi1>
    %c-16_i32 = arith.constant -16 : i32
    %53 = vector.broadcast %c-16_i32 : i32 to vector<256x256xi32>
    %54 = arith.addi %3, %53 : vector<256x256xi32>
    %55 = arith.cmpi eq, %2, %54 : vector<256x256xi32>
    %56 = arith.andi %52, %55 : vector<256x256xi1>
    %cst_18 = arith.constant 1.000000e+00 : f32
    %cst_19 = arith.constant 0.000000e+00 : f32
    %57 = vector.broadcast %cst_18 : f32 to vector<256x256xf32>
    %58 = vector.broadcast %cst_19 : f32 to vector<256x256xf32>
    %59 = arith.select %56, %57, %58 : vector<256x256xi1>, vector<256x256xf32>
    %60 = arith.truncf %59 : vector<256x256xf32> to vector<256x256xbf16>
    %cst_20 = arith.constant dense<0.000000e+00> : vector<8x256xf32>
    %61 = tpu.matmul %1, %60, %cst_20 {dimension_numbers = #tpu.dot_dimension_numbers<[1], [0], [0], [1], [0, 0, 1, 1], [], []>} : vector<8x256xbf16>, vector<256x256xbf16>, vector<8x256xf32> -> vector<8x256xf32>
    %62 = arith.truncf %61 : vector<8x256xf32> to vector<8x256xbf16>
    %c1 = arith.constant 1 : index
    %c0_21 = arith.constant 0 : index
    %c0_22 = arith.constant 0 : index
    %63 = vector.load %arg2[%c1, %c0_21, %c0_22] : memref<9x16x8xbf16, #tpu.memory_space<vmem>>, vector<1x16x8xbf16>
    %64 = vector.shape_cast %63 : vector<1x16x8xbf16> to vector<16x8xbf16>
    %cst_23 = arith.constant dense<0.000000e+00> : vector<16x256xf32>
    %65 = tpu.matmul %64, %62, %cst_23 {dimension_numbers = #tpu.dot_dimension_numbers<[1], [0], [0], [1], [0, 0, 1, 1], [], []>} : vector<16x8xbf16>, vector<8x256xbf16>, vector<16x256xf32> -> vector<16x256xf32>
    %66 = arith.addf %37, %65 : vector<16x256xf32>
    %c-1_i32_24 = arith.constant -1 : i32
    %67 = vector.broadcast %c-1_i32_24 : i32 to vector<256x256xi32>
    %68 = arith.addi %5, %67 : vector<256x256xi32>
    %c1_i32 = arith.constant 1 : i32
    %69 = vector.broadcast %c1_i32 : i32 to vector<256x256xi32>
    %70 = arith.addi %7, %69 : vector<256x256xi32>
    %c0_i32_25 = arith.constant 0 : i32
    %71 = vector.broadcast %c0_i32_25 : i32 to vector<256x256xi32>
    %72 = arith.cmpi sge, %68, %71 : vector<256x256xi32>
    %c16_i32_26 = arith.constant 16 : i32
    %73 = vector.broadcast %c16_i32_26 : i32 to vector<256x256xi32>
    %74 = arith.cmpi slt, %68, %73 : vector<256x256xi32>
    %75 = arith.andi %72, %74 : vector<256x256xi1>
    %c0_i32_27 = arith.constant 0 : i32
    %76 = vector.broadcast %c0_i32_27 : i32 to vector<256x256xi32>
    %77 = arith.cmpi sge, %70, %76 : vector<256x256xi32>
    %78 = arith.andi %75, %77 : vector<256x256xi1>
    %c16_i32_28 = arith.constant 16 : i32
    %79 = vector.broadcast %c16_i32_28 : i32 to vector<256x256xi32>
    %80 = arith.cmpi slt, %70, %79 : vector<256x256xi32>
    %81 = arith.andi %78, %80 : vector<256x256xi1>
    %c-15_i32 = arith.constant -15 : i32
    %82 = vector.broadcast %c-15_i32 : i32 to vector<256x256xi32>
    %83 = arith.addi %3, %82 : vector<256x256xi32>
    %84 = arith.cmpi eq, %2, %83 : vector<256x256xi32>
    %85 = arith.andi %81, %84 : vector<256x256xi1>
    %cst_29 = arith.constant 1.000000e+00 : f32
    %cst_30 = arith.constant 0.000000e+00 : f32
    %86 = vector.broadcast %cst_29 : f32 to vector<256x256xf32>
    %87 = vector.broadcast %cst_30 : f32 to vector<256x256xf32>
    %88 = arith.select %85, %86, %87 : vector<256x256xi1>, vector<256x256xf32>
    %89 = arith.truncf %88 : vector<256x256xf32> to vector<256x256xbf16>
    %cst_31 = arith.constant dense<0.000000e+00> : vector<8x256xf32>
    %90 = tpu.matmul %1, %89, %cst_31 {dimension_numbers = #tpu.dot_dimension_numbers<[1], [0], [0], [1], [0, 0, 1, 1], [], []>} : vector<8x256xbf16>, vector<256x256xbf16>, vector<8x256xf32> -> vector<8x256xf32>
    %91 = arith.truncf %90 : vector<8x256xf32> to vector<8x256xbf16>
    %c2 = arith.constant 2 : index
    %c0_32 = arith.constant 0 : index
    %c0_33 = arith.constant 0 : index
    %92 = vector.load %arg2[%c2, %c0_32, %c0_33] : memref<9x16x8xbf16, #tpu.memory_space<vmem>>, vector<1x16x8xbf16>
    %93 = vector.shape_cast %92 : vector<1x16x8xbf16> to vector<16x8xbf16>
    %cst_34 = arith.constant dense<0.000000e+00> : vector<16x256xf32>
    %94 = tpu.matmul %93, %91, %cst_34 {dimension_numbers = #tpu.dot_dimension_numbers<[1], [0], [0], [1], [0, 0, 1, 1], [], []>} : vector<16x8xbf16>, vector<8x256xbf16>, vector<16x256xf32> -> vector<16x256xf32>
    %95 = arith.addf %66, %94 : vector<16x256xf32>
    %c0_i32_35 = arith.constant 0 : i32
    %96 = vector.broadcast %c0_i32_35 : i32 to vector<256x256xi32>
    %97 = arith.addi %5, %96 : vector<256x256xi32>
    %c-1_i32_36 = arith.constant -1 : i32
    %98 = vector.broadcast %c-1_i32_36 : i32 to vector<256x256xi32>
    %99 = arith.addi %7, %98 : vector<256x256xi32>
    %c0_i32_37 = arith.constant 0 : i32
    %100 = vector.broadcast %c0_i32_37 : i32 to vector<256x256xi32>
    %101 = arith.cmpi sge, %97, %100 : vector<256x256xi32>
    %c16_i32_38 = arith.constant 16 : i32
    %102 = vector.broadcast %c16_i32_38 : i32 to vector<256x256xi32>
    %103 = arith.cmpi slt, %97, %102 : vector<256x256xi32>
    %104 = arith.andi %101, %103 : vector<256x256xi1>
    %c0_i32_39 = arith.constant 0 : i32
    %105 = vector.broadcast %c0_i32_39 : i32 to vector<256x256xi32>
    %106 = arith.cmpi sge, %99, %105 : vector<256x256xi32>
    %107 = arith.andi %104, %106 : vector<256x256xi1>
    %c16_i32_40 = arith.constant 16 : i32
    %108 = vector.broadcast %c16_i32_40 : i32 to vector<256x256xi32>
    %109 = arith.cmpi slt, %99, %108 : vector<256x256xi32>
    %110 = arith.andi %107, %109 : vector<256x256xi1>
    %c-1_i32_41 = arith.constant -1 : i32
    %111 = vector.broadcast %c-1_i32_41 : i32 to vector<256x256xi32>
    %112 = arith.addi %3, %111 : vector<256x256xi32>
    %113 = arith.cmpi eq, %2, %112 : vector<256x256xi32>
    %114 = arith.andi %110, %113 : vector<256x256xi1>
    %cst_42 = arith.constant 1.000000e+00 : f32
    %cst_43 = arith.constant 0.000000e+00 : f32
    %115 = vector.broadcast %cst_42 : f32 to vector<256x256xf32>
    %116 = vector.broadcast %cst_43 : f32 to vector<256x256xf32>
    %117 = arith.select %114, %115, %116 : vector<256x256xi1>, vector<256x256xf32>
    %118 = arith.truncf %117 : vector<256x256xf32> to vector<256x256xbf16>
    %cst_44 = arith.constant dense<0.000000e+00> : vector<8x256xf32>
    %119 = tpu.matmul %1, %118, %cst_44 {dimension_numbers = #tpu.dot_dimension_numbers<[1], [0], [0], [1], [0, 0, 1, 1], [], []>} : vector<8x256xbf16>, vector<256x256xbf16>, vector<8x256xf32> -> vector<8x256xf32>
    %120 = arith.truncf %119 : vector<8x256xf32> to vector<8x256xbf16>
    %c3 = arith.constant 3 : index
    %c0_45 = arith.constant 0 : index
    %c0_46 = arith.constant 0 : index
    %121 = vector.load %arg2[%c3, %c0_45, %c0_46] : memref<9x16x8xbf16, #tpu.memory_space<vmem>>, vector<1x16x8xbf16>
    %122 = vector.shape_cast %121 : vector<1x16x8xbf16> to vector<16x8xbf16>
    %cst_47 = arith.constant dense<0.000000e+00> : vector<16x256xf32>
    %123 = tpu.matmul %122, %120, %cst_47 {dimension_numbers = #tpu.dot_dimension_numbers<[1], [0], [0], [1], [0, 0, 1, 1], [], []>} : vector<16x8xbf16>, vector<8x256xbf16>, vector<16x256xf32> -> vector<16x256xf32>
    %124 = arith.addf %95, %123 : vector<16x256xf32>
    %c0_i32_48 = arith.constant 0 : i32
    %125 = vector.broadcast %c0_i32_48 : i32 to vector<256x256xi32>
    %126 = arith.addi %5, %125 : vector<256x256xi32>
    %c0_i32_49 = arith.constant 0 : i32
    %127 = vector.broadcast %c0_i32_49 : i32 to vector<256x256xi32>
    %128 = arith.addi %7, %127 : vector<256x256xi32>
    %c0_i32_50 = arith.constant 0 : i32
    %129 = vector.broadcast %c0_i32_50 : i32 to vector<256x256xi32>
    %130 = arith.cmpi sge, %126, %129 : vector<256x256xi32>
    %c16_i32_51 = arith.constant 16 : i32
    %131 = vector.broadcast %c16_i32_51 : i32 to vector<256x256xi32>
    %132 = arith.cmpi slt, %126, %131 : vector<256x256xi32>
    %133 = arith.andi %130, %132 : vector<256x256xi1>
    %c0_i32_52 = arith.constant 0 : i32
    %134 = vector.broadcast %c0_i32_52 : i32 to vector<256x256xi32>
    %135 = arith.cmpi sge, %128, %134 : vector<256x256xi32>
    %136 = arith.andi %133, %135 : vector<256x256xi1>
    %c16_i32_53 = arith.constant 16 : i32
    %137 = vector.broadcast %c16_i32_53 : i32 to vector<256x256xi32>
    %138 = arith.cmpi slt, %128, %137 : vector<256x256xi32>
    %139 = arith.andi %136, %138 : vector<256x256xi1>
    %c0_i32_54 = arith.constant 0 : i32
    %140 = vector.broadcast %c0_i32_54 : i32 to vector<256x256xi32>
    %141 = arith.addi %3, %140 : vector<256x256xi32>
    %142 = arith.cmpi eq, %2, %141 : vector<256x256xi32>
    %143 = arith.andi %139, %142 : vector<256x256xi1>
    %cst_55 = arith.constant 1.000000e+00 : f32
    %cst_56 = arith.constant 0.000000e+00 : f32
    %144 = vector.broadcast %cst_55 : f32 to vector<256x256xf32>
    %145 = vector.broadcast %cst_56 : f32 to vector<256x256xf32>
    %146 = arith.select %143, %144, %145 : vector<256x256xi1>, vector<256x256xf32>
    %147 = arith.truncf %146 : vector<256x256xf32> to vector<256x256xbf16>
    %cst_57 = arith.constant dense<0.000000e+00> : vector<8x256xf32>
    %148 = tpu.matmul %1, %147, %cst_57 {dimension_numbers = #tpu.dot_dimension_numbers<[1], [0], [0], [1], [0, 0, 1, 1], [], []>} : vector<8x256xbf16>, vector<256x256xbf16>, vector<8x256xf32> -> vector<8x256xf32>
    %149 = arith.truncf %148 : vector<8x256xf32> to vector<8x256xbf16>
    %c4 = arith.constant 4 : index
    %c0_58 = arith.constant 0 : index
    %c0_59 = arith.constant 0 : index
    %150 = vector.load %arg2[%c4, %c0_58, %c0_59] : memref<9x16x8xbf16, #tpu.memory_space<vmem>>, vector<1x16x8xbf16>
    %151 = vector.shape_cast %150 : vector<1x16x8xbf16> to vector<16x8xbf16>
    %cst_60 = arith.constant dense<0.000000e+00> : vector<16x256xf32>
    %152 = tpu.matmul %151, %149, %cst_60 {dimension_numbers = #tpu.dot_dimension_numbers<[1], [0], [0], [1], [0, 0, 1, 1], [], []>} : vector<16x8xbf16>, vector<8x256xbf16>, vector<16x256xf32> -> vector<16x256xf32>
    %153 = arith.addf %124, %152 : vector<16x256xf32>
    %c0_i32_61 = arith.constant 0 : i32
    %154 = vector.broadcast %c0_i32_61 : i32 to vector<256x256xi32>
    %155 = arith.addi %5, %154 : vector<256x256xi32>
    %c1_i32_62 = arith.constant 1 : i32
    %156 = vector.broadcast %c1_i32_62 : i32 to vector<256x256xi32>
    %157 = arith.addi %7, %156 : vector<256x256xi32>
    %c0_i32_63 = arith.constant 0 : i32
    %158 = vector.broadcast %c0_i32_63 : i32 to vector<256x256xi32>
    %159 = arith.cmpi sge, %155, %158 : vector<256x256xi32>
    %c16_i32_64 = arith.constant 16 : i32
    %160 = vector.broadcast %c16_i32_64 : i32 to vector<256x256xi32>
    %161 = arith.cmpi slt, %155, %160 : vector<256x256xi32>
    %162 = arith.andi %159, %161 : vector<256x256xi1>
    %c0_i32_65 = arith.constant 0 : i32
    %163 = vector.broadcast %c0_i32_65 : i32 to vector<256x256xi32>
    %164 = arith.cmpi sge, %157, %163 : vector<256x256xi32>
    %165 = arith.andi %162, %164 : vector<256x256xi1>
    %c16_i32_66 = arith.constant 16 : i32
    %166 = vector.broadcast %c16_i32_66 : i32 to vector<256x256xi32>
    %167 = arith.cmpi slt, %157, %166 : vector<256x256xi32>
    %168 = arith.andi %165, %167 : vector<256x256xi1>
    %c1_i32_67 = arith.constant 1 : i32
    %169 = vector.broadcast %c1_i32_67 : i32 to vector<256x256xi32>
    %170 = arith.addi %3, %169 : vector<256x256xi32>
    %171 = arith.cmpi eq, %2, %170 : vector<256x256xi32>
    %172 = arith.andi %168, %171 : vector<256x256xi1>
    %cst_68 = arith.constant 1.000000e+00 : f32
    %cst_69 = arith.constant 0.000000e+00 : f32
    %173 = vector.broadcast %cst_68 : f32 to vector<256x256xf32>
    %174 = vector.broadcast %cst_69 : f32 to vector<256x256xf32>
    %175 = arith.select %172, %173, %174 : vector<256x256xi1>, vector<256x256xf32>
    %176 = arith.truncf %175 : vector<256x256xf32> to vector<256x256xbf16>
    %cst_70 = arith.constant dense<0.000000e+00> : vector<8x256xf32>
    %177 = tpu.matmul %1, %176, %cst_70 {dimension_numbers = #tpu.dot_dimension_numbers<[1], [0], [0], [1], [0, 0, 1, 1], [], []>} : vector<8x256xbf16>, vector<256x256xbf16>, vector<8x256xf32> -> vector<8x256xf32>
    %178 = arith.truncf %177 : vector<8x256xf32> to vector<8x256xbf16>
    %c5 = arith.constant 5 : index
    %c0_71 = arith.constant 0 : index
    %c0_72 = arith.constant 0 : index
    %179 = vector.load %arg2[%c5, %c0_71, %c0_72] : memref<9x16x8xbf16, #tpu.memory_space<vmem>>, vector<1x16x8xbf16>
    %180 = vector.shape_cast %179 : vector<1x16x8xbf16> to vector<16x8xbf16>
    %cst_73 = arith.constant dense<0.000000e+00> : vector<16x256xf32>
    %181 = tpu.matmul %180, %178, %cst_73 {dimension_numbers = #tpu.dot_dimension_numbers<[1], [0], [0], [1], [0, 0, 1, 1], [], []>} : vector<16x8xbf16>, vector<8x256xbf16>, vector<16x256xf32> -> vector<16x256xf32>
    %182 = arith.addf %153, %181 : vector<16x256xf32>
    %c1_i32_74 = arith.constant 1 : i32
    %183 = vector.broadcast %c1_i32_74 : i32 to vector<256x256xi32>
    %184 = arith.addi %5, %183 : vector<256x256xi32>
    %c-1_i32_75 = arith.constant -1 : i32
    %185 = vector.broadcast %c-1_i32_75 : i32 to vector<256x256xi32>
    %186 = arith.addi %7, %185 : vector<256x256xi32>
    %c0_i32_76 = arith.constant 0 : i32
    %187 = vector.broadcast %c0_i32_76 : i32 to vector<256x256xi32>
    %188 = arith.cmpi sge, %184, %187 : vector<256x256xi32>
    %c16_i32_77 = arith.constant 16 : i32
    %189 = vector.broadcast %c16_i32_77 : i32 to vector<256x256xi32>
    %190 = arith.cmpi slt, %184, %189 : vector<256x256xi32>
    %191 = arith.andi %188, %190 : vector<256x256xi1>
    %c0_i32_78 = arith.constant 0 : i32
    %192 = vector.broadcast %c0_i32_78 : i32 to vector<256x256xi32>
    %193 = arith.cmpi sge, %186, %192 : vector<256x256xi32>
    %194 = arith.andi %191, %193 : vector<256x256xi1>
    %c16_i32_79 = arith.constant 16 : i32
    %195 = vector.broadcast %c16_i32_79 : i32 to vector<256x256xi32>
    %196 = arith.cmpi slt, %186, %195 : vector<256x256xi32>
    %197 = arith.andi %194, %196 : vector<256x256xi1>
    %c15_i32_80 = arith.constant 15 : i32
    %198 = vector.broadcast %c15_i32_80 : i32 to vector<256x256xi32>
    %199 = arith.addi %3, %198 : vector<256x256xi32>
    %200 = arith.cmpi eq, %2, %199 : vector<256x256xi32>
    %201 = arith.andi %197, %200 : vector<256x256xi1>
    %cst_81 = arith.constant 1.000000e+00 : f32
    %cst_82 = arith.constant 0.000000e+00 : f32
    %202 = vector.broadcast %cst_81 : f32 to vector<256x256xf32>
    %203 = vector.broadcast %cst_82 : f32 to vector<256x256xf32>
    %204 = arith.select %201, %202, %203 : vector<256x256xi1>, vector<256x256xf32>
    %205 = arith.truncf %204 : vector<256x256xf32> to vector<256x256xbf16>
    %cst_83 = arith.constant dense<0.000000e+00> : vector<8x256xf32>
    %206 = tpu.matmul %1, %205, %cst_83 {dimension_numbers = #tpu.dot_dimension_numbers<[1], [0], [0], [1], [0, 0, 1, 1], [], []>} : vector<8x256xbf16>, vector<256x256xbf16>, vector<8x256xf32> -> vector<8x256xf32>
    %207 = arith.truncf %206 : vector<8x256xf32> to vector<8x256xbf16>
    %c6 = arith.constant 6 : index
    %c0_84 = arith.constant 0 : index
    %c0_85 = arith.constant 0 : index
    %208 = vector.load %arg2[%c6, %c0_84, %c0_85] : memref<9x16x8xbf16, #tpu.memory_space<vmem>>, vector<1x16x8xbf16>
    %209 = vector.shape_cast %208 : vector<1x16x8xbf16> to vector<16x8xbf16>
    %cst_86 = arith.constant dense<0.000000e+00> : vector<16x256xf32>
    %210 = tpu.matmul %209, %207, %cst_86 {dimension_numbers = #tpu.dot_dimension_numbers<[1], [0], [0], [1], [0, 0, 1, 1], [], []>} : vector<16x8xbf16>, vector<8x256xbf16>, vector<16x256xf32> -> vector<16x256xf32>
    %211 = arith.addf %182, %210 : vector<16x256xf32>
    %c1_i32_87 = arith.constant 1 : i32
    %212 = vector.broadcast %c1_i32_87 : i32 to vector<256x256xi32>
    %213 = arith.addi %5, %212 : vector<256x256xi32>
    %c0_i32_88 = arith.constant 0 : i32
    %214 = vector.broadcast %c0_i32_88 : i32 to vector<256x256xi32>
    %215 = arith.addi %7, %214 : vector<256x256xi32>
    %c0_i32_89 = arith.constant 0 : i32
    %216 = vector.broadcast %c0_i32_89 : i32 to vector<256x256xi32>
    %217 = arith.cmpi sge, %213, %216 : vector<256x256xi32>
    %c16_i32_90 = arith.constant 16 : i32
    %218 = vector.broadcast %c16_i32_90 : i32 to vector<256x256xi32>
    %219 = arith.cmpi slt, %213, %218 : vector<256x256xi32>
    %220 = arith.andi %217, %219 : vector<256x256xi1>
    %c0_i32_91 = arith.constant 0 : i32
    %221 = vector.broadcast %c0_i32_91 : i32 to vector<256x256xi32>
    %222 = arith.cmpi sge, %215, %221 : vector<256x256xi32>
    %223 = arith.andi %220, %222 : vector<256x256xi1>
    %c16_i32_92 = arith.constant 16 : i32
    %224 = vector.broadcast %c16_i32_92 : i32 to vector<256x256xi32>
    %225 = arith.cmpi slt, %215, %224 : vector<256x256xi32>
    %226 = arith.andi %223, %225 : vector<256x256xi1>
    %c16_i32_93 = arith.constant 16 : i32
    %227 = vector.broadcast %c16_i32_93 : i32 to vector<256x256xi32>
    %228 = arith.addi %3, %227 : vector<256x256xi32>
    %229 = arith.cmpi eq, %2, %228 : vector<256x256xi32>
    %230 = arith.andi %226, %229 : vector<256x256xi1>
    %cst_94 = arith.constant 1.000000e+00 : f32
    %cst_95 = arith.constant 0.000000e+00 : f32
    %231 = vector.broadcast %cst_94 : f32 to vector<256x256xf32>
    %232 = vector.broadcast %cst_95 : f32 to vector<256x256xf32>
    %233 = arith.select %230, %231, %232 : vector<256x256xi1>, vector<256x256xf32>
    %234 = arith.truncf %233 : vector<256x256xf32> to vector<256x256xbf16>
    %cst_96 = arith.constant dense<0.000000e+00> : vector<8x256xf32>
    %235 = tpu.matmul %1, %234, %cst_96 {dimension_numbers = #tpu.dot_dimension_numbers<[1], [0], [0], [1], [0, 0, 1, 1], [], []>} : vector<8x256xbf16>, vector<256x256xbf16>, vector<8x256xf32> -> vector<8x256xf32>
    %236 = arith.truncf %235 : vector<8x256xf32> to vector<8x256xbf16>
    %c7 = arith.constant 7 : index
    %c0_97 = arith.constant 0 : index
    %c0_98 = arith.constant 0 : index
    %237 = vector.load %arg2[%c7, %c0_97, %c0_98] : memref<9x16x8xbf16, #tpu.memory_space<vmem>>, vector<1x16x8xbf16>
    %238 = vector.shape_cast %237 : vector<1x16x8xbf16> to vector<16x8xbf16>
    %cst_99 = arith.constant dense<0.000000e+00> : vector<16x256xf32>
    %239 = tpu.matmul %238, %236, %cst_99 {dimension_numbers = #tpu.dot_dimension_numbers<[1], [0], [0], [1], [0, 0, 1, 1], [], []>} : vector<16x8xbf16>, vector<8x256xbf16>, vector<16x256xf32> -> vector<16x256xf32>
    %240 = arith.addf %211, %239 : vector<16x256xf32>
    %c1_i32_100 = arith.constant 1 : i32
    %241 = vector.broadcast %c1_i32_100 : i32 to vector<256x256xi32>
    %242 = arith.addi %5, %241 : vector<256x256xi32>
    %c1_i32_101 = arith.constant 1 : i32
    %243 = vector.broadcast %c1_i32_101 : i32 to vector<256x256xi32>
    %244 = arith.addi %7, %243 : vector<256x256xi32>
    %c0_i32_102 = arith.constant 0 : i32
    %245 = vector.broadcast %c0_i32_102 : i32 to vector<256x256xi32>
    %246 = arith.cmpi sge, %242, %245 : vector<256x256xi32>
    %c16_i32_103 = arith.constant 16 : i32
    %247 = vector.broadcast %c16_i32_103 : i32 to vector<256x256xi32>
    %248 = arith.cmpi slt, %242, %247 : vector<256x256xi32>
    %249 = arith.andi %246, %248 : vector<256x256xi1>
    %c0_i32_104 = arith.constant 0 : i32
    %250 = vector.broadcast %c0_i32_104 : i32 to vector<256x256xi32>
    %251 = arith.cmpi sge, %244, %250 : vector<256x256xi32>
    %252 = arith.andi %249, %251 : vector<256x256xi1>
    %c16_i32_105 = arith.constant 16 : i32
    %253 = vector.broadcast %c16_i32_105 : i32 to vector<256x256xi32>
    %254 = arith.cmpi slt, %244, %253 : vector<256x256xi32>
    %255 = arith.andi %252, %254 : vector<256x256xi1>
    %c17_i32 = arith.constant 17 : i32
    %256 = vector.broadcast %c17_i32 : i32 to vector<256x256xi32>
    %257 = arith.addi %3, %256 : vector<256x256xi32>
    %258 = arith.cmpi eq, %2, %257 : vector<256x256xi32>
    %259 = arith.andi %255, %258 : vector<256x256xi1>
    %cst_106 = arith.constant 1.000000e+00 : f32
    %cst_107 = arith.constant 0.000000e+00 : f32
    %260 = vector.broadcast %cst_106 : f32 to vector<256x256xf32>
    %261 = vector.broadcast %cst_107 : f32 to vector<256x256xf32>
    %262 = arith.select %259, %260, %261 : vector<256x256xi1>, vector<256x256xf32>
    %263 = arith.truncf %262 : vector<256x256xf32> to vector<256x256xbf16>
    %cst_108 = arith.constant dense<0.000000e+00> : vector<8x256xf32>
    %264 = tpu.matmul %1, %263, %cst_108 {dimension_numbers = #tpu.dot_dimension_numbers<[1], [0], [0], [1], [0, 0, 1, 1], [], []>} : vector<8x256xbf16>, vector<256x256xbf16>, vector<8x256xf32> -> vector<8x256xf32>
    %265 = arith.truncf %264 : vector<8x256xf32> to vector<8x256xbf16>
    %c8 = arith.constant 8 : index
    %c0_109 = arith.constant 0 : index
    %c0_110 = arith.constant 0 : index
    %266 = vector.load %arg2[%c8, %c0_109, %c0_110] : memref<9x16x8xbf16, #tpu.memory_space<vmem>>, vector<1x16x8xbf16>
    %267 = vector.shape_cast %266 : vector<1x16x8xbf16> to vector<16x8xbf16>
    %cst_111 = arith.constant dense<0.000000e+00> : vector<16x256xf32>
    %268 = tpu.matmul %267, %265, %cst_111 {dimension_numbers = #tpu.dot_dimension_numbers<[1], [0], [0], [1], [0, 0, 1, 1], [], []>} : vector<16x8xbf16>, vector<8x256xbf16>, vector<16x256xf32> -> vector<16x256xf32>
    %269 = arith.addf %240, %268 : vector<16x256xf32>
    %c0_112 = arith.constant 0 : index
    %c0_113 = arith.constant 0 : index
    %270 = vector.load %arg3[%c0_112, %c0_113] : memref<16x1xf32, #tpu.memory_space<vmem>>, vector<16x1xf32>
    %271 = vector.broadcast %270 : vector<16x1xf32> to vector<16x256xf32>
    %272 = arith.addf %269, %271 : vector<16x256xf32>
    %c0_114 = arith.constant 0 : index
    %c0_115 = arith.constant 0 : index
    %c0_116 = arith.constant 0 : index
    %273 = vector.load %arg4[%c0_114, %c0_115, %c0_116] : memref<1x16x256xf32, #tpu.memory_space<vmem>>, vector<1x16x256xf32>
    %274 = vector.shape_cast %273 : vector<1x16x256xf32> to vector<16x256xf32>
    %275 = vector.shape_cast %272 : vector<16x256xf32> to vector<1x16x256xf32>
    tpu.vector_store %arg4[%c0_114, %c0_115, %c0_116], %275 {strides = array<i32>} : memref<1x16x256xf32, #tpu.memory_space<vmem>>, vector<1x16x256xf32>,
    return
  }
  func.func @transform_0(%arg0: i32) -> (i32, i32, i32) {
    %c0_i32 = arith.constant 0 : i32
    %c0_i32_0 = arith.constant 0 : i32
    %c0_i32_1 = arith.constant 0 : i32
    return %arg0, %c0_i32, %c0_i32_0 : i32, i32, i32
  }
  func.func @transform_1(%arg0: i32) -> (i32, i32, i32) {
    %c0_i32 = arith.constant 0 : i32
    %c0_i32_0 = arith.constant 0 : i32
    %c0_i32_1 = arith.constant 0 : i32
    %c0_i32_2 = arith.constant 0 : i32
    return %c0_i32, %c0_i32_0, %c0_i32_1 : i32, i32, i32
  }
  func.func @transform_2(%arg0: i32) -> (i32, i32) {
    %c0_i32 = arith.constant 0 : i32
    %c0_i32_0 = arith.constant 0 : i32
    %c0_i32_1 = arith.constant 0 : i32
    return %c0_i32, %c0_i32_0 : i32, i32
  }
  func.func @transform_3(%arg0: i32) -> (i32, i32, i32) {
    %c0_i32 = arith.constant 0 : i32
    %c0_i32_0 = arith.constant 0 : i32
    %c0_i32_1 = arith.constant 0 : i32
    return %arg0, %c0_i32, %c0_i32_0 : i32, i32, i32
  }
}

</mosaic_0001>

<bundles_post_ra>
// kernel: tpu_custom_call.1
= control target key start
LH: loop header
LB: loop body
LE: loop exit
PB: predicated region body
PF: predicated region fallthrough
CT: control target
= control target key end

     0   :  { %8 = vsyncpa [#allocation3], 0  ;;  %s6092_s0 = inlined_call_operand.vmem [shape: bf16[2,8,256], index: 0, kind: input, shape index: {}]   ;;  %s6093_s1 = inlined_call_operand.vmem [shape: bf16[9,16,8], index: 1, kind: input, shape index: {}]   ;;  %s6094_s2 = inlined_call_operand.vmem [shape: f32[16,1], index: 2, kind: input, shape index: {}]   ;;  %s6095_s3 = inlined_call_operand.hbm [shape: f32[2,16,256], index: 3, kind: output, shape index: {}]  }
   0x1   :  { %10 = vsyncpa [#allocation3 + $0x1], 0  ;;  %s3919_s12 = smov 0   ;;  %s3921_s13 = smov 0  }
   0x2   :  { %s3923_s14 = smov 0   ;;  %s3925_s15 = smov 0  }
   0x3 LB: > { %s3940_s16 = sadd.s32 4294967295, %s3888_s15   ;;  %s3376_s17 = sadd.s32 4294967294, %s3888_s15   ;;  %s3888_s15 = sphi %s3925_s15, %s6268_s15   ;;  %s3884_s14 = sphi %s3923_s14, %s6267_s14   ;;  %s3880_s13 = sphi %s3921_s13, %s6266_s13   ;;  %s3876_s12 = sphi %s3919_s12, %s6265_s12  }
   0x4   : > { %s3944_s18 = sadd.s32 1, %s3888_s15   ;;  %s91_s19 = sadd.s32 1, %s3884_s14 }
   0x5   : > { %s88_s20 = ssub.s32 %s3888_s15, %s3944_s18  ;;  %p101_p0 = scmp.ne.s32.totalorder %s3884_s14, %s3880_s13 }
   0x6   : > { %p89_p1 = scmp.eq.s32.totalorder %s88_s20, 0  ;;  %p102_p2 = scmp.eq.s32.totalorder %s3940_s16, 1 }
   0x7   : > { %p107_p3 = scmp.ne.s32.totalorder %s3880_s13, %s3876_s12  ;;  %p108_p4 = scmp.eq.s32.totalorder %s3376_s17, 1 }
   0x8   : > { %s3955_s21 = scalar_select %p89_p1, %s3884_s14, %s91_s19  }
   0x9   : > { %p3957_p5 = por %p102_p2, %p101_p0  ;;  %p3961_p6 = por %p108_p4, %p107_p3 }
   0xa   : > { %p3379_p7 = scmp.ge.s32.totalorder %s3888_s15, 1  ;;  %p140_p8 = scmp.lt.s32.totalorder %s3888_s15, 3 }
   0xc   : > { %p141_p9 = pnand %p3379_p7, %p140_p8 }
   0xd   : > { %v171_v0 = vlaneseq (!%p141_p9)  ;;  %v3890_v1 = vmov (!%p141_p9), 0.0|0.0   ;;  %p164_p10 = scmp.lt.s32.totalorder (!%p141_p9), %s3940_s16, 1  ;;  %v3891_v13 = vmov (!%p141_p9), 1.0|1.0   ;;  %v3892_v20 = vmov (!%p141_p9), 1.0   ;;  %v3817_v56 = vld [vmem:[%s6093_s1 + $0x8] sm:$0xff] (!%p141_p9)  }
   0xe   : > { %144 = sbr.rel (%p141_p9) target bundleno = 1513 (0x5e9), region = 32  ;;  %741 = vmatprep.subr.bf16.mxu1 (!%p141_p9), %v3890_v1  ;;  %462 = vmatprep.subr.bf16.mxu0 (!%p141_p9), %v3890_v1  ;;  %v3895_v36 = vmov (!%p141_p9), 0   ;;  %s161_s6 = sand.u32 (!%p141_p9), 1, %s3880_s13  }
   0xf   : > { %v3969_v2 = vshrl.u32 (!%p141_p9), %v171_v0, 7  ;;  %v3971_v3 = vand.u32 (!%p141_p9), 127, %v171_v0  ;;  %3814 = vset.pattern.permute.xlu0 (!%p141_p9), %v3895_v36  ;;  %s3380_s7 = sshll.u32 (!%p141_p9), %s161_s6, 5  ;;  %s3734_s10 = sshll.u32 (!%p141_p9), %s3940_s16, 9 }
  0x10   : > { %s163_s8 = scalar_lea.vmem (!%p141_p9), [#allocation2], %s3380_s7  ;;  %s6049_s19 = scalar_lea.hbm (!%p141_p9), %s6095_s3, %s3734_s10 }
  0x11   : > { %v3974_v4 = vadd.s32 (!%p141_p9), 8, %v3969_v2  ;;  %v3977_v5 = vshra.s32 (!%p141_p9), %v3971_v3, 4  ;;  %v3980_v6 = vadd.s32 (!%p141_p9), 4294967280, %v3971_v3  ;;  %v3987_v8 = vadd.s32 (!%p141_p9), 16, %v3969_v2  ;;  %s3314_s9 = sshll.u32 (!%p141_p9), %s163_s8, 4  ;;  %s6044_s9 = int_to_ptr.vmem [resolvable:$true] %s3314_s9 }
  0x12   : > { %v3990_v9 = vadd.s32 (!%p141_p9), 24, %v3969_v2  ;;  %v4001_v11 = vadd.s32 (!%p141_p9), 32, %v3969_v2  ;;  %v4009_v12 = vadd.s32 (!%p141_p9), 40, %v3969_v2  ;;  %v4015_v14 = vadd.s32 (!%p141_p9), 48, %v3969_v2  ;;  %s3826_s20 = scalar_lea.vmem (!%p141_p9), %s6044_s9, 512 }
  0x13   : > { %v211_v7 = vadd.s32 (!%p141_p9), 4294967295, %v3977_v5  ;;  %vm517_vm0 = vcmp.eq.s32.totalorder (!%p141_p9), %v3969_v2, %v3980_v6  ;;  %vm519_vm3 = vcmp.eq.s32.totalorder (!%p141_p9), %v3974_v4, %v3980_v6  ;;  %vm521_vm7 = vcmp.eq.s32.totalorder (!%p141_p9), %v3987_v8, %v3980_v6  ;;  %p3827_p11 = scmp.ne.s32.totalorder (!%p141_p9), %s6044_s9, %s3826_s20 }
  0x14   : > { %vm523_vm9 = vcmp.eq.s32.totalorder (!%p141_p9), %v3990_v9, %v3980_v6  ;;  %vm525_vm11 = vcmp.eq.s32.totalorder (!%p141_p9), %v4001_v11, %v3980_v6  ;;  %v4023_v15 = vadd.s32 (!%p141_p9), 56, %v3969_v2  ;;  %vm527_vm13 = vcmp.eq.s32.totalorder (!%p141_p9), %v4009_v12, %v3980_v6 }
  0x15   : > { %vm215_vm1 = vcmp.ge.s32.totalorder %v211_v7, 0  ;;  %vm217_vm2 = vcmp.lt.s32.totalorder %v211_v7, 16  ;;  %s165_s24 = scalar_select %p164_p10, %s3940_s16, 1  ;;  %v4030_v16 = vadd.s32 64, %v3969_v2  ;;  %v4038_v17 = vadd.s32 72, %v3969_v2 }
  0x16   : > { %vm3994_vm4 = vmand %vm215_vm1, %vm217_vm2  ;;  %v4041_v18 = vadd.s32 128, %v3971_v3  ;;  %vm531_vm2 = vcmp.eq.s32.totalorder %v4023_v15, %v3980_v6  ;;  %v4052_v19 = vadd.s32 80, %v3969_v2  ;;  %v4063_v21 = vadd.s32 88, %v3969_v2  ;;  %s6051_s16 = scalar_lea.sflag [#allocation3], %s161_s6  ;;  %p3828_p12 = pnand %p3827_p11, %p3957_p5 }
  0x17   : > { %vm581_vm5 = vmand %vm3994_vm4, %vm517_vm0  ;;  %s3733_s25 = sshll.u32 %s165_s24, 3  ;;  %vm529_vm0 = vcmp.eq.s32.totalorder %v4015_v14, %v3980_v6  ;;  %v4079_v24 = vadd.s32 96, %v3969_v2  ;;  %v4090_v26 = vadd.s32 104, %v3969_v2  ;;  %v4120_v31 = vadd.s32 112, %v3969_v2  ;;  %s3896_s24 = smov [#allocation2]  }
  0x18   : > { %vm583_vm6 = vmand %vm3994_vm4, %vm519_vm3  ;;  %s168_s28 = scalar_lea.vmem %s6092_s0, %s3733_s25  ;;  %v4073_v23 = vshra.s32 %v4041_v18, 4  ;;  %v4123_v32 = vadd.s32 4294967280, %v4041_v18  ;;  %v4135_v34 = vadd.s32 120, %v3969_v2  ;;  %v4165_v37 = vadd.s32 128, %v3969_v2  ;;  %p3829_p13 = pneg %p3828_p12 }
  0x19   : > { %vm3418_vm8 = vmpackc.low %vm583_vm6, %vm581_vm5  ;;  %vm533_vm6 = vcmp.eq.s32.totalorder %v4030_v16, %v3980_v6  ;;  %v4065_v22 = vld [vmem:[%s168_s28] sm:$0xff]  ;;  %v4172_v39 = vadd.s32 136, %v3969_v2  ;;  %v4181_v40 = vadd.s32 144, %v3969_v2  ;;  %v4186_v41 = vadd.s32 152, %v3969_v2  ;;  %s3830_s25 = sshll.u32 %s3896_s24, 4  ;;  %s3831_s25 = int_to_ptr.vmem [resolvable:$false] %s3830_s25 }
  0x1a   : > { %3419 = vmatpush1.bf16.msk.msra.mxu1 %vm3418_vm8, %v3891_v13  ;;  %vm585_vm10 = vmand %vm3994_vm4, %vm521_vm7  ;;  %vm535_vm8 = vcmp.eq.s32.totalorder %v4038_v17, %v3980_v6  ;;  %v4094_v27 = vcombine.high %v4065_v22, %v4065_v22  ;;  %v212_v29 = vadd.s32 4294967295, %v4073_v23  ;;  %v4192_v42 = vadd.s32 160, %v3969_v2  ;;  %s3832_s26 = scalar_lea.vmem %s3831_s25, 1024  ;;  %p3833_p0 = scmp.lt.s32.totalorder %s6044_s9, %s3831_s25 }
  0x1b   : > { %743 = vmatprep.subr.bf16.mxu1 %v3890_v1  ;;  %vm587_vm12 = vmand %vm3994_vm4, %vm523_vm9  ;;  %v4200_v43 = vadd.s32 168, %v3969_v2  ;;  %v4207_v44 = vadd.s32 176, %v3969_v2  ;;  %v4219_v46 = vadd.s32 184, %v3969_v2  ;;  %v209_v47 = vand.u32 15, %v3971_v3  ;;  %p3834_p1 = scmp.lt.s32.totalorder %s3832_s26, %s3826_s20 }
  0x1c   : > { %vm3420_vm14 = vmpackc.low %vm587_vm12, %vm585_vm10  ;;  %773 = vmatprep.mubr.bf16.mxu1 %v4094_v27  ;;  %494 = vmatprep.mubr.bf16.mxu0 %v4094_v27  ;;  %v4230_v48 = vadd.s32 192, %v3969_v2  ;;  %v4241_v50 = vadd.s32 200, %v3969_v2  ;;  %v4262_v53 = vadd.s32 4294967279, %v3971_v3  ;;  %v4308_v57 = vadd.s32 208, %v3969_v2 }
  0x1d   : > { %vm589_vm15 = vmand %vm3994_vm4, %vm525_vm11  ;;  %vm537_vm11 = vcmp.eq.s32.totalorder %v4052_v19, %v3980_v6  ;;  %v4251_v51 = vadd.s32 4294967295, %v209_v47  ;;  %v4310_v58 = vadd.s32 1, %v209_v47  ;;  %v4313_v59 = vadd.s32 216, %v3969_v2  ;;  %p3835_p2 = por %p3834_p1, %p3833_p0 }
  0x1e   : > { %3421 = vmatpush1.bf16.msk.msra.mxu1 %vm3420_vm14, %v3891_v13  ;;  %vm591_vm1 = vmand %vm3994_vm4, %vm527_vm13  ;;  %vm539_vm13 = vcmp.eq.s32.totalorder %v4063_v21, %v3980_v6  ;;  %v4326_v60 = vadd.s32 224, %v3969_v2  ;;  %v4333_v61 = vadd.s32 232, %v3969_v2  ;;  %v4358_v63 = vadd.s32 4294967281, %v3971_v3 }
  0x1f   : > { %745 = vmatprep.subr.bf16.mxu1 %v3890_v1  ;;  %vm3422_vm3 = vmpackc.low %vm591_vm1, %vm589_vm15  ;;  %v4375_v0 = vcombine.low %v4065_v22, %v4065_v22  ;;  %v4438_v10 = vadd.s32 4294967279, %v4041_v18  ;;  %v3893_v22 = vmov 0.0   ;;  %v4542_v30 = vadd.s32 4294967281, %v4041_v18  ;;  %p3836_p3 = pnand %p3835_p2, %p3829_p13 }
  0x20   : > { %vm4056_vm5 = vmand %vm3994_vm4, %vm529_vm0  ;;  %vm541_vm0 = vcmp.eq.s32.totalorder %v4079_v24, %v3980_v6  ;;  %v4456_v25 = vpack.c.bf16 %v3892_v20, %v3893_v22  ;;  %v4584_v33 = vpack.c.bf16 %v3893_v22, %v3892_v20  ;;  %v4687_v35 = vadd.s32 240, %v3969_v2 }
  0x21   : > { %vm595_vm7 = vmand %vm3994_vm4, %vm531_vm2  ;;  %vm543_vm2 = vcmp.eq.s32.totalorder %v4090_v26, %v3980_v6  ;;  %v210_v6 = vand.u32 15, %v4041_v18 }
  0x22   : > { %3423 = vmatpush1.bf16.msk.msra.mxu1 %vm3422_vm3, %v3891_v13  ;;  %vm3424_vm9 = vmpackc.low %vm595_vm7, %vm4056_vm5  ;;  %vm218_vm7 = vcmp.lt.s32.totalorder %v212_v29, 16 }
  0x23   : > { %747 = vmatprep.subr.bf16.mxu1 %v3890_v1  ;;  %vm4083_vm10 = vmand %vm3994_vm4, %vm533_vm6  ;;  %vm216_vm6 = vcmp.ge.s32.totalorder %v212_v29, 0  ;;  %v4430_v7 = vadd.s32 4294967295, %v210_v6  ;;  %v4534_v29 = vadd.s32 1, %v210_v6 }
  0x24   : > { %vm4098_vm12 = vmand %vm3994_vm4, %vm535_vm8 }
  0x25   : > { %vm3426_vm14 = vmpackc.low %vm4098_vm12, %vm4083_vm10 }
  0x26   : > { %3425 = vmatpush1.bf16.msk.msra.mxu1 %vm3424_vm9, %v3891_v13  ;;  %vm4113_vm15 = vmand %vm3994_vm4, %vm537_vm11  ;;  %vm546_vm9 = vcmp.eq.s32.totalorder %v4120_v31, %v4123_v32  ;;  %vm548_vm11 = vcmp.eq.s32.totalorder %v4135_v34, %v4123_v32 }
  0x27   : > { %749 = vmatprep.subr.bf16.mxu1 %v3890_v1  ;;  %vm4128_vm1 = vmand %vm3994_vm4, %vm539_vm13 }
  0x28   : > { %vm3428_vm3 = vmpackc.low %vm4128_vm1, %vm4113_vm15  ;;  %vm552_vm1 = vcmp.eq.s32.totalorder %v4172_v39, %v4123_v32 }
  0x29   : > { %vm4145_vm5 = vmand %vm3994_vm4, %vm541_vm0  ;;  %vm550_vm0 = vcmp.eq.s32.totalorder %v4165_v37, %v4123_v32 }
  0x2a   : > { %3427 = vmatpush1.bf16.msk.msra.mxu1 %vm3426_vm14, %v3891_v13  ;;  %vm4152_vm8 = vmand %vm3994_vm4, %vm543_vm2 }
  0x2b   : > { %751 = vmatprep.subr.bf16.mxu1 %v3890_v1  ;;  %vm3430_vm10 = vmpackc.low %vm4152_vm8, %vm4145_vm5 }
  0x2c   : > { %vm4167_vm12 = vmand %vm216_vm6, %vm218_vm7  ;;  %vm556_vm6 = vcmp.eq.s32.totalorder %v4186_v41, %v4123_v32 }
  0x2d   : > { %vm610_vm13 = vmand %vm4167_vm12, %vm546_vm9  ;;  %vm558_vm9 = vcmp.eq.s32.totalorder %v4192_v42, %v4123_v32 }
  0x2e   : > { %3429 = vmatpush1.bf16.msk.msra.mxu1 %vm3428_vm3, %v3891_v13  ;;  %vm612_vm14 = vmand %vm4167_vm12, %vm548_vm11  ;;  %vm554_vm3 = vcmp.eq.s32.totalorder %v4181_v40, %v4123_v32  ;;  %vm560_vm11 = vcmp.eq.s32.totalorder %v4200_v43, %v4123_v32 }
  0x2f   : > { %753 = vmatprep.subr.bf16.mxu1 %v3890_v1  ;;  %vm3432_vm15 = vmpackc.low %vm612_vm14, %vm610_vm13 }
  0x30   : > { %vm614_vm2 = vmand %vm4167_vm12, %vm550_vm0 }
  0x31   : > { %vm616_vm5 = vmand %vm4167_vm12, %vm552_vm1  ;;  %vm564_vm1 = vcmp.eq.s32.totalorder %v4219_v46, %v4123_v32 }
  0x32   : > { %3431 = vmatpush1.bf16.msk.msra.mxu1 %vm3430_vm10, %v3891_v13  ;;  %vm3434_vm7 = vmpackc.low %vm616_vm5, %vm614_vm2  ;;  %vm566_vm5 = vcmp.eq.s32.totalorder %v4230_v48, %v4123_v32 }
  0x33   : > { %3433 = vmatprep.subr.msk.bf16.mxu1 %vm3432_vm15, %v3891_v13  ;;  %vm4212_vm8 = vmand %vm4167_vm12, %vm554_vm3  ;;  %vm562_vm15 = vcmp.eq.s32.totalorder %v4207_v44, %v4123_v32 }
  0x34   : > { %vm620_vm10 = vmand %vm4167_vm12, %vm556_vm6 }
  0x35   : > { %vm3436_vm13 = vmpackc.low %vm620_vm10, %vm4212_vm8  ;;  %vm6101_vm10 = vcmp.ge.s32.totalorder %v4251_v51, 0 }
  0x36   : > { %756 = vmatpush1.bf16.msra.mxu1 %v3890_v1  ;;  %vm4234_vm14 = vmand %vm4167_vm12, %vm558_vm9 }
  0x37   : > { %3435 = vmatprep.subr.msk.bf16.mxu1 %vm3434_vm7, %v3891_v13  ;;  %vm624_vm0 = vmand %vm4167_vm12, %vm560_vm11  ;;  %vm568_vm7 = vcmp.eq.s32.totalorder %v4241_v50, %v4123_v32 }
  0x38   : > { %vm3438_vm2 = vmpackc.low %vm624_vm0, %vm4234_vm14 }
  0x39   : > { %vm4255_vm3 = vmand %vm4167_vm12, %vm562_vm15  ;;  %vm233_vm15 = vcmp.eq.s32.totalorder %v3974_v4, %v4262_v53 }
  0x3a   : > { %758 = vmatpush1.bf16.msra.mxu1 %v3890_v1  ;;  %vm628_vm6 = vmand %vm4167_vm12, %vm564_vm1 }
  0x3b   : > { %3437 = vmatprep.subr.msk.bf16.mxu1 %vm3436_vm13, %v3891_v13  ;;  %vm3440_vm8 = vmpackc.low %vm628_vm6, %vm4255_vm3  ;;  %vm231_vm13 = vcmp.eq.s32.totalorder %v3969_v2, %v4262_v53  ;;  %vm6096_vm6 = vcmp.lt.s32.totalorder %v4310_v58, 16 }
  0x3c   : > { %vm4274_vm9 = vmand %vm4167_vm12, %vm566_vm5  ;;  %vm570_vm5 = vcmp.eq.s32.totalorder %v4308_v57, %v4123_v32 }
  0x3d   : > { %vm4281_vm11 = vmand %vm4167_vm12, %vm568_vm7  ;;  %vm572_vm7 = vcmp.eq.s32.totalorder %v4313_v59, %v4123_v32 }
  0x3e   : > { %760 = vmatpush1.bf16.msra.mxu1 %v3890_v1  ;;  %vm3442_vm14 = vmpackc.low %vm4281_vm11, %vm4274_vm9  ;;  %vm235_vm9 = vcmp.eq.s32.totalorder %v3987_v8, %v4262_v53 }
  0x3f   : > { %3439 = vmatprep.subr.msk.bf16.mxu1 %vm3438_vm2, %v3891_v13  ;;  %vm4298_vm0 = vmand %vm3994_vm4, %vm6101_vm10 }
  0x40   : > { %vm295_vm1 = vmand %vm4298_vm0, %vm231_vm13 }
  0x41   : > { %vm297_vm2 = vmand %vm4298_vm0, %vm233_vm15 }
  0x42   : > { %762 = vmatpush1.bf16.msra.mxu1 %v3890_v1  ;;  %vm3385_vm3 = vmpackc.low %vm297_vm2, %vm295_vm1  ;;  %vm574_vm2 = vcmp.eq.s32.totalorder %v4326_v60, %v4123_v32 }
  0x43   : > { %3441 = vmatprep.subr.msk.bf16.mxu1 %vm3440_vm8, %v3891_v13  ;;  %3386 = vmatpush1.bf16.msk.msra.mxu0 %vm3385_vm3, %v3891_v13  ;;  %vm634_vm8 = vmand %vm4167_vm12, %vm570_vm5  ;;  %vm576_vm3 = vcmp.eq.s32.totalorder %v4333_v61, %v4123_v32 }
  0x44   : > { %464 = vmatprep.subr.bf16.mxu0 %v3890_v1  ;;  %vm4339_vm11 = vmand %vm3994_vm4, %vm6096_vm6 }
  0x45   : > { %vm636_vm13 = vmand %vm4167_vm12, %vm572_vm7 }
  0x46   : > { %764 = vmatpush1.bf16.msra.mxu1 %v3890_v1  ;;  %vm3444_vm15 = vmpackc.low %vm636_vm13, %vm634_vm8  ;;  %vm239_vm8 = vcmp.eq.s32.totalorder %v4001_v11, %v4262_v53  ;;  %vm241_vm13 = vcmp.eq.s32.totalorder %v4009_v12, %v4262_v53 }
  0x47   : > { %3443 = vmatprep.subr.msk.bf16.mxu1 %vm3442_vm14, %v3891_v13  ;;  %vm237_vm14 = vcmp.eq.s32.totalorder %v3990_v9, %v4262_v53  ;;  %vm299_vm1 = vmand %vm4298_vm0, %vm235_vm9 }
  0x48   : > { %vm301_vm4 = vmand %vm4298_vm0, %vm237_vm14 }
  0x49   : > { %vm3387_vm5 = vmpackc.low %vm301_vm4, %vm299_vm1  ;;  %vm915_vm1 = vcmp.eq.s32.totalorder %v3969_v2, %v4358_v63  ;;  %vm917_vm4 = vcmp.eq.s32.totalorder %v3974_v4, %v4358_v63 }
  0x4a   : > { %766 = vmatpush1.bf16.msra.mxu1 %v3890_v1  ;;  %3388 = vmatpush1.bf16.msk.msra.mxu0 %vm3387_vm5, %v3891_v13  ;;  %vm638_vm7 = vmand %vm4167_vm12, %vm574_vm2 }
  0x4b   : > { %3445 = vmatprep.subr.msk.bf16.mxu1 %vm3444_vm15, %v3891_v13  ;;  %vm640_vm9 = vmand %vm4167_vm12, %vm576_vm3  ;;  %466 = vmatprep.subr.bf16.mxu0 %v3890_v1 }
  0x4c   : > { %vm3446_vm14 = vmpackc.low %vm640_vm9, %vm638_vm7  ;;  %vm243_vm7 = vcmp.eq.s32.totalorder %v4015_v14, %v4262_v53  ;;  %vm245_vm9 = vcmp.eq.s32.totalorder %v4023_v15, %v4262_v53 }
  0x4d   : > { %vm303_vm15 = vmand %vm4298_vm0, %vm239_vm8 }
  0x4e   : > { %768 = vmatpush1.bf16.msra.mxu1 %v3890_v1  ;;  %vm305_vm2 = vmand %vm4298_vm0, %vm241_vm13 }
  0x4f   : > { %3447 = vmatprep.subr.msk.bf16.mxu1 %vm3446_vm14, %v3891_v13  ;;  %vm3389_vm3 = vmpackc.low %vm305_vm2, %vm303_vm15  ;;  %vm919_vm15 = vcmp.eq.s32.totalorder %v3987_v8, %v4358_v63  ;;  %vm921_vm2 = vcmp.eq.s32.totalorder %v3990_v9, %v4358_v63 }
  0x50   : > { %3390 = vmatpush1.bf16.msk.msra.mxu0 %vm3389_vm3, %v3891_v13  ;;  %vm979_vm5 = vmand %vm4339_vm11, %vm915_vm1 }
  0x51   : > { %468 = vmatprep.subr.bf16.mxu0 %v3890_v1  ;;  %vm981_vm8 = vmand %vm4339_vm11, %vm917_vm4 }
  0x52   : > { %770 = vmatpush1.bf16.msra.mxu1 %v3890_v1  ;;  %vm3456_vm13 = vmpackc.low %vm981_vm8, %vm979_vm5  ;;  %vm247_vm5 = vcmp.eq.s32.totalorder %v4030_v16, %v4262_v53  ;;  %vm249_vm8 = vcmp.eq.s32.totalorder %v4038_v17, %v4262_v53 }
  0x53   : > { %1139 = vmatprep.subr.bf16.mxu1 %v3890_v1  ;;  %vm307_vm14 = vmand %vm4298_vm0, %vm243_vm7 }
  0x54   : > { %vm309_vm1 = vmand %vm4298_vm0, %vm245_vm9 }
  0x55   : > { %774 = vmatmul.mubr.bf16.vlgmr.msra.gmra.mrb[0].mxu1 %v4375_v0  ;;  %vm3391_vm4 = vmpackc.low %vm309_vm1, %vm307_vm14  ;;  %vm923_vm14 = vcmp.eq.s32.totalorder %v4001_v11, %v4358_v63  ;;  %vm925_vm1 = vcmp.eq.s32.totalorder %v4009_v12, %v4358_v63 }
  0x56   : > { %1171 = vmatprep.mubr.bf16.mxu1 %v4094_v27  ;;  %3457 = vmatpush1.bf16.msk.msra.mxu1 %vm3456_vm13, %v3891_v13  ;;  %vm983_vm3 = vmand %vm4339_vm11, %vm919_vm15 }
  0x57   : > { %1141 = vmatprep.subr.bf16.mxu1 %v3890_v1  ;;  %3392 = vmatpush1.bf16.msk.msra.mxu0 %vm3391_vm4, %v3891_v13  ;;  %vm985_vm7 = vmand %vm4339_vm11, %vm921_vm2 }
  0x58   : > { %470 = vmatprep.subr.bf16.mxu0 %v3890_v1  ;;  %vm3458_vm9 = vmpackc.low %vm985_vm7, %vm983_vm3  ;;  %vm251_vm3 = vcmp.eq.s32.totalorder %v4052_v19, %v4262_v53  ;;  %vm253_vm7 = vcmp.eq.s32.totalorder %v4063_v21, %v4262_v53 }
  0x59   : > { %vm311_vm13 = vmand %vm4298_vm0, %vm247_vm5 }
  0x5a   : > { %3459 = vmatpush1.bf16.msk.msra.mxu1 %vm3458_vm9, %v3891_v13  ;;  %vm313_vm15 = vmand %vm4298_vm0, %vm249_vm8 }
  0x5b   : > { %1143 = vmatprep.subr.bf16.mxu1 %v3890_v1  ;;  %vm3393_vm2 = vmpackc.low %vm313_vm15, %vm311_vm13  ;;  %vm6097_vm13 = vcmp.ge.s32.totalorder %v4430_v7, 0  ;;  %vm258_vm15 = vcmp.eq.s32.totalorder %v4090_v26, %v4438_v10 }
  0x5c   : > { %3394 = vmatpush1.bf16.msk.msra.mxu0 %vm3393_vm2, %v3891_v13  ;;  %vm987_vm4 = vmand %vm4339_vm11, %vm923_vm14 }
  0x5d   : > { %472 = vmatprep.subr.bf16.mxu0 %v3890_v1  ;;  %vm989_vm5 = vmand %vm4339_vm11, %vm925_vm1 }
  0x5e   : > { %vm3460_vm8 = vmpackc.low %vm989_vm5, %vm987_vm4  ;;  %vm927_vm4 = vcmp.eq.s32.totalorder %v4015_v14, %v4358_v63  ;;  %vm929_vm5 = vcmp.eq.s32.totalorder %v4023_v15, %v4358_v63 }
  0x5f   : > { %3461 = vmatpush1.bf16.msk.msra.mxu1 %vm3460_vm8, %v3891_v13  ;;  %vm315_vm9 = vmand %vm4298_vm0, %vm251_vm3 }
  0x60   : > { %vm317_vm14 = vmand %vm4298_vm0, %vm253_vm7  ;;  %1145 = vmatprep.subr.bf16.mxu1 %v3890_v1  ;;  %vm6102_vm7 = vmmov 1  }
  0x61   : > { %vm3395_vm1 = vmpackc.low %vm317_vm14, %vm315_vm9  ;;  %vm255_vm14 = vcmp.eq.s32.totalorder %v4079_v24, %v4262_v53 }
  0x62   : > { %3396 = vmatpush1.bf16.msk.msra.mxu0 %vm3395_vm1, %v3891_v13  ;;  %vm4463_vm2 = vmand %vm4167_vm12, %vm6097_vm13 }
  0x63   : > { %vm322_vm3 = vmand %vm4463_vm2, %vm258_vm15  ;;  %vm257_vm15 = vcmp.eq.s32.totalorder %v4090_v26, %v4262_v53 }
  0x64   : > { %vm3397_vm8 = vmpackc.low %vm322_vm3, %vm6102_vm7 }
  0x65   : > { %3399 = vmatprep.subr.msk.bf16.mxu0 %vm3397_vm8, %v4456_v25  ;;  %vm991_vm9 = vmand %vm4339_vm11, %vm927_vm4  ;;  %vm260_vm8 = vcmp.eq.s32.totalorder %v4120_v31, %v4438_v10 }
  0x66   : > { %vm993_vm1 = vmand %vm4339_vm11, %vm929_vm5  ;;  %vm262_vm5 = vcmp.eq.s32.totalorder %v4135_v34, %v4438_v10 }
  0x67   : > { %vm3462_vm6 = vmpackc.low %vm993_vm1, %vm991_vm9  ;;  %vm931_vm9 = vcmp.eq.s32.totalorder %v4030_v16, %v4358_v63 }
  0x68   : > { %3463 = vmatpush1.bf16.msk.msra.mxu1 %vm3462_vm6, %v3891_v13  ;;  %vm319_vm3 = vmand %vm4298_vm0, %vm255_vm14 }
  0x69   : > { %vm321_vm4 = vmand %vm4298_vm0, %vm257_vm15  ;;  %1147 = vmatprep.subr.bf16.mxu1 %v3890_v1  ;;  %vm933_vm0 = vcmp.eq.s32.totalorder %v4038_v17, %v4358_v63 }
  0x6a   : > { %vm3400_vm13 = vmpackc.low %vm321_vm4, %vm319_vm3 }
  0x6b   : > { %3401 = vmatpush1.bf16.msk.msra.mxu0 %vm3400_vm13, %v3891_v13  ;;  %vm324_vm6 = vmand %vm4463_vm2, %vm260_vm8  ;;  %vm264_vm13 = vcmp.eq.s32.totalorder %v4165_v37, %v4438_v10  ;;  %vm266_vm8 = vcmp.eq.s32.totalorder %v4172_v39, %v4438_v10 }
  0x6c   : > { %vm326_vm14 = vmand %vm4463_vm2, %vm262_vm5 }
  0x6d   : > { %vm3402_vm1 = vmpackc.low %vm326_vm14, %vm324_vm6  ;;  %vm935_vm6 = vcmp.eq.s32.totalorder %v4052_v19, %v4358_v63  ;;  %vm937_vm14 = vcmp.eq.s32.totalorder %v4063_v21, %v4358_v63 }
  0x6e   : > { %3403 = vmatprep.subr.msk.bf16.mxu0 %vm3402_vm1, %v3891_v13  ;;  %vm995_vm15 = vmand %vm4339_vm11, %vm931_vm9 }
  0x6f   : > { %vm997_vm3 = vmand %vm4339_vm11, %vm933_vm0  ;;  %477 = vmatpush1.bf16.msra.mxu0 %v3890_v1 }
  0x70   : > { %vm3464_vm4 = vmpackc.low %vm997_vm3, %vm995_vm15  ;;  %vm268_vm15 = vcmp.eq.s32.totalorder %v4181_v40, %v4438_v10  ;;  %vm270_vm3 = vcmp.eq.s32.totalorder %v4186_v41, %v4438_v10 }
  0x71   : > { %3465 = vmatpush1.bf16.msk.msra.mxu1 %vm3464_vm4, %v3891_v13  ;;  %vm328_vm5 = vmand %vm4463_vm2, %vm264_vm13 }
  0x72   : > { %1149 = vmatprep.subr.bf16.mxu1 %v3890_v1  ;;  %vm330_vm9 = vmand %vm4463_vm2, %vm266_vm8 }
  0x73   : > { %vm3404_vm0 = vmpackc.low %vm330_vm9, %vm328_vm5  ;;  %vm939_vm5 = vcmp.eq.s32.totalorder %v4079_v24, %v4358_v63  ;;  %vm941_vm9 = vcmp.eq.s32.totalorder %v4090_v26, %v4358_v63 }
  0x74   : > { %3405 = vmatprep.subr.msk.bf16.mxu0 %vm3404_vm0, %v3891_v13  ;;  %vm999_vm1 = vmand %vm4339_vm11, %vm935_vm6 }
  0x75   : > { %vm1001_vm13 = vmand %vm4339_vm11, %vm937_vm14  ;;  %479 = vmatpush1.bf16.msra.mxu0 %v3890_v1 }
  0x76   : > { %vm3466_vm8 = vmpackc.low %vm1001_vm13, %vm999_vm1  ;;  %vm6098_vm1 = vcmp.lt.s32.totalorder %v4534_v29, 16  ;;  %vm944_vm13 = vcmp.eq.s32.totalorder %v4120_v31, %v4542_v30 }
  0x77   : > { %3467 = vmatpush1.bf16.msk.msra.mxu1 %vm3466_vm8, %v3891_v13  ;;  %vm332_vm4 = vmand %vm4463_vm2, %vm268_vm15  ;;  %vm946_vm8 = vcmp.eq.s32.totalorder %v4135_v34, %v4542_v30 }
  0x78   : > { %1151 = vmatprep.subr.bf16.mxu1 %v3890_v1  ;;  %vm334_vm6 = vmand %vm4463_vm2, %vm270_vm3 }
  0x79   : > { %vm3406_vm14 = vmpackc.low %vm334_vm6, %vm332_vm4  ;;  %vm272_vm6 = vcmp.eq.s32.totalorder %v4192_v42, %v4438_v10 }
  0x7a   : > { %3407 = vmatprep.subr.msk.bf16.mxu0 %vm3406_vm14, %v3891_v13  ;;  %vm1003_vm0 = vmand %vm4339_vm11, %vm939_vm5  ;;  %vm274_vm14 = vcmp.eq.s32.totalorder %v4200_v43, %v4438_v10 }
  0x7b   : > { %vm1005_vm15 = vmand %vm4339_vm11, %vm941_vm9  ;;  %481 = vmatpush1.bf16.msra.mxu0 %v3890_v1 }
  0x7c   : > { %vm3468_vm3 = vmpackc.low %vm1005_vm15, %vm1003_vm0  ;;  %vm943_vm15 = vcmp.eq.s32.totalorder %v4120_v31, %v4358_v63  ;;  %v4881_v63 = vadd.s32 248, %v3969_v2 }
  0x7d   : > { %3469 = vmatpush1.bf16.msk.msra.mxu1 %vm3468_vm3, %v3891_v13  ;;  %vm4565_vm4 = vmand %vm4167_vm12, %vm6098_vm1 }
  0x7e   : > { %vm1008_vm5 = vmand %vm4565_vm4, %vm944_vm13 }
  0x7f   : > { %vm1010_vm9 = vmand %vm4565_vm4, %vm946_vm8  ;;  %vm948_vm8 = vcmp.eq.s32.totalorder %v4165_v37, %v4542_v30 }
  0x80   : > { %vm3470_vm0 = vmpackc.low %vm1010_vm9, %vm1008_vm5 }
  0x81   : > { %3471 = vmatprep.subr.msk.bf16.mxu1 %vm3470_vm0, %v3891_v13  ;;  %vm336_vm12 = vmand %vm4463_vm2, %vm272_vm6  ;;  %vm950_vm6 = vcmp.eq.s32.totalorder %v4172_v39, %v4542_v30  ;;  %vm276_vm0 = vcmp.eq.s32.totalorder %v4207_v44, %v4438_v10 }
  0x82   : > { %vm338_vm13 = vmand %vm4463_vm2, %vm274_vm14 }
  0x83   : > { %vm3408_vm3 = vmpackc.low %vm338_vm13, %vm336_vm12 }
  0x84   : > { %3409 = vmatprep.subr.msk.bf16.mxu0 %vm3408_vm3, %v3891_v13  ;;  %vm1007_vm5 = vmand %vm4339_vm11, %vm943_vm15  ;;  %vm278_vm11 = vcmp.eq.s32.totalorder %v4219_v46, %v4438_v10  ;;  %vm952_vm3 = vcmp.eq.s32.totalorder %v4181_v40, %v4542_v30 }
  0x85   : > { %vm3472_vm9 = vmpackc.low %vm6102_vm7, %vm1007_vm5  ;;  %483 = vmatpush1.bf16.msra.mxu0 %v3890_v1  ;;  %vm954_vm5 = vcmp.eq.s32.totalorder %v4186_v41, %v4542_v30 }
  0x86   : > { %3474 = vmatpush1.bf16.msk.msra.mxu1 %vm3472_vm9, %v4584_v33  ;;  %vm1012_vm14 = vmand %vm4565_vm4, %vm948_vm8 }
  0x87   : > { %vm1014_vm12 = vmand %vm4565_vm4, %vm950_vm6 }
  0x88   : > { %vm3475_vm15 = vmpackc.low %vm1014_vm12, %vm1012_vm14  ;;  %vm280_vm14 = vcmp.eq.s32.totalorder %v4230_v48, %v4438_v10  ;;  %vm282_vm12 = vcmp.eq.s32.totalorder %v4241_v50, %v4438_v10 }
  0x89   : > { %3476 = vmatprep.subr.msk.bf16.mxu1 %vm3475_vm15, %v3891_v13  ;;  %vm340_vm13 = vmand %vm4463_vm2, %vm276_vm0 }
  0x8a   : > { %vm342_vm8 = vmand %vm4463_vm2, %vm278_vm11  ;;  %1156 = vmatpush1.bf16.msra.mxu1 %v3890_v1 }
  0x8b   : > { %vm3410_vm6 = vmpackc.low %vm342_vm8, %vm340_vm13  ;;  %vm956_vm13 = vcmp.eq.s32.totalorder %v4192_v42, %v4542_v30  ;;  %vm958_vm8 = vcmp.eq.s32.totalorder %v4200_v43, %v4542_v30 }
  0x8c   : > { %3411 = vmatprep.subr.msk.bf16.mxu0 %vm3410_vm6, %v3891_v13  ;;  %vm1016_vm9 = vmand %vm4565_vm4, %vm952_vm3 }
  0x8d   : > { %485 = vmatpush1.bf16.msra.mxu0 %v3890_v1  ;;  %vm1018_vm0 = vmand %vm4565_vm4, %vm954_vm5 }
  0x8e   : > { %vm3477_vm11 = vmpackc.low %vm1018_vm0, %vm1016_vm9  ;;  %vm284_vm9 = vcmp.eq.s32.totalorder %v4308_v57, %v4438_v10  ;;  %vm286_vm0 = vcmp.eq.s32.totalorder %v4313_v59, %v4438_v10 }
  0x8f   : > { %3478 = vmatprep.subr.msk.bf16.mxu1 %vm3477_vm11, %v3891_v13  ;;  %vm344_vm15 = vmand %vm4463_vm2, %vm280_vm14 }
  0x90   : > { %vm346_vm3 = vmand %vm4463_vm2, %vm282_vm12  ;;  %1158 = vmatpush1.bf16.msra.mxu1 %v3890_v1 }
  0x91   : > { %vm3412_vm5 = vmpackc.low %vm346_vm3, %vm344_vm15  ;;  %vm960_vm15 = vcmp.eq.s32.totalorder %v4207_v44, %v4542_v30  ;;  %vm962_vm3 = vcmp.eq.s32.totalorder %v4219_v46, %v4542_v30 }
  0x92   : > { %3413 = vmatprep.subr.msk.bf16.mxu0 %vm3412_vm5, %v3891_v13  ;;  %vm1020_vm6 = vmand %vm4565_vm4, %vm956_vm13 }
  0x93   : > { %487 = vmatpush1.bf16.msra.mxu0 %v3890_v1  ;;  %vm1022_vm14 = vmand %vm4565_vm4, %vm958_vm8 }
  0x94   : > { %vm3479_vm12 = vmpackc.low %vm1022_vm14, %vm1020_vm6  ;;  %vm288_vm6 = vcmp.eq.s32.totalorder %v4326_v60, %v4438_v10  ;;  %vm290_vm14 = vcmp.eq.s32.totalorder %v4333_v61, %v4438_v10 }
  0x95   : > { %3480 = vmatprep.subr.msk.bf16.mxu1 %vm3479_vm12, %v3891_v13  ;;  %vm348_vm11 = vmand %vm4463_vm2, %vm284_vm9 }
  0x96   : > { %vm350_vm13 = vmand %vm4463_vm2, %vm286_vm0  ;;  %1160 = vmatpush1.bf16.msra.mxu1 %v3890_v1 }
  0x97   : > { %vm3414_vm8 = vmpackc.low %vm350_vm13, %vm348_vm11  ;;  %vm964_vm11 = vcmp.eq.s32.totalorder %v4230_v48, %v4542_v30  ;;  %vm966_vm13 = vcmp.eq.s32.totalorder %v4241_v50, %v4542_v30 }
  0x98   : > { %3415 = vmatprep.subr.msk.bf16.mxu0 %vm3414_vm8, %v3891_v13  ;;  %vm1024_vm5 = vmand %vm4565_vm4, %vm960_vm15 }
  0x99   : > { %489 = vmatpush1.bf16.msra.mxu0 %v3890_v1  ;;  %vm1026_vm9 = vmand %vm4565_vm4, %vm962_vm3 }
  0x9a   : > { %vm3481_vm0 = vmpackc.low %vm1026_vm9, %vm1024_vm5  ;;  %vm968_vm5 = vcmp.eq.s32.totalorder %v4308_v57, %v4542_v30 }
  0x9b   : > { %3482 = vmatprep.subr.msk.bf16.mxu1 %vm3481_vm0, %v3891_v13  ;;  %vm352_vm12 = vmand %vm4463_vm2, %vm288_vm6  ;;  %vm972_vm0 = vcmp.eq.s32.totalorder %v4326_v60, %v4542_v30 }
  0x9c   : > { %vm354_vm15 = vmand %vm4463_vm2, %vm290_vm14  ;;  %1162 = vmatpush1.bf16.msra.mxu1 %v3890_v1  ;;  %vm970_vm2 = vcmp.eq.s32.totalorder %v4313_v59, %v4542_v30 }
  0x9d   : > { %vm3416_vm3 = vmpackc.low %vm354_vm15, %vm352_vm12 }
  0x9e   : > { %3417 = vmatprep.subr.msk.bf16.mxu0 %vm3416_vm3, %v3891_v13  ;;  %vm1028_vm8 = vmand %vm4565_vm4, %vm964_vm11  ;;  %vm974_vm11 = vcmp.eq.s32.totalorder %v4333_v61, %v4542_v30  ;;  %vm976_vm3 = vcmp.eq.s32.totalorder %v4687_v35, %v4542_v30 }
  0x9f   : > { %491 = vmatpush1.bf16.msra.mxu0 %v3890_v1  ;;  %vm1030_vm6 = vmand %vm4565_vm4, %vm966_vm13 }
  0xa0   : > { %vm3483_vm9 = vmpackc.low %vm1030_vm6, %vm1028_vm8 }
  0xa1   : > { %3484 = vmatprep.subr.msk.bf16.mxu1 %vm3483_vm9, %v3891_v13  ;;  %vm1032_vm14 = vmand %vm4565_vm4, %vm968_vm5  ;;  %vm1248_vm9 = vcmp.lt.s32.totalorder %v3977_v5, 16 }
  0xa2   : > { %495 = vmatmul.mubr.bf16.vlgmr.msra.gmra.mrb[0].mxu0 %v4375_v0  ;;  %1164 = vmatpush1.bf16.msra.mxu1 %v3890_v1  ;;  %vm1034_vm12 = vmand %vm4565_vm4, %vm970_vm2 }
  0xa3   : > { %vm3485_vm15 = vmpackc.low %vm1034_vm12, %vm1032_vm14  ;;  %835 = vmatprep.mubr.bf16.mxu0 %v3895_v36  ;;  %vm1593_vm14 = vcmp.eq.s32.totalorder %v3969_v2, %v3971_v3 }
  0xa4   : > { %3486 = vmatprep.subr.msk.bf16.mxu1 %vm3485_vm15, %v3891_v13  ;;  %vm1036_vm13 = vmand %vm4565_vm4, %vm972_vm0  ;;  %vm1595_vm0 = vcmp.eq.s32.totalorder %v3974_v4, %v3971_v3 }
  0xa5   : > { %vm1038_vm8 = vmand %vm4565_vm4, %vm974_vm11 }
  0xa6   : > { %1166 = vmatpush1.bf16.msra.mxu1 %v3890_v1  ;;  %vm3487_vm5 = vmpackc.low %vm1038_vm8, %vm1036_vm13  ;;  %vm1599_vm8 = vcmp.eq.s32.totalorder %v3990_v9, %v3971_v3 }
  0xa7   : > { %3488 = vmatprep.subr.msk.bf16.mxu1 %vm3487_vm5, %v3891_v13  ;;  %vm1040_vm6 = vmand %vm4565_vm4, %vm976_vm3  ;;  %vm1246_vm4 = vcmp.ge.s32.totalorder %v3977_v5, 0  ;;  %vm1597_vm3 = vcmp.eq.s32.totalorder %v3987_v8, %v3971_v3 }
  0xa8   : > { %vm3489_vm2 = vmpackc.low %vm6102_vm7, %vm1040_vm6 }
  0xa9   : > { %vm4726_vm12 = vmand %vm1246_vm4, %vm1248_vm9  ;;  %vm1601_vm4 = vcmp.eq.s32.totalorder %v4001_v11, %v3971_v3  ;;  %vm1603_vm9 = vcmp.eq.s32.totalorder %v4009_v12, %v3971_v3 }
  0xaa   : > { %1168 = vmatpush1.bf16.msra.mxu1 %v3890_v1  ;;  %vm1657_vm11 = vmand %vm4726_vm12, %vm1593_vm14 }
  0xab   : > { %3491 = vmatprep.subr.msk.bf16.mxu1 %vm3489_vm2, %v4584_v33  ;;  %vm1659_vm15 = vmand %vm4726_vm12, %vm1595_vm0 }
  0xac   : > { %vm3537_vm13 = vmpackc.low %vm1659_vm15, %vm1657_vm11  ;;  %vm6100_vm11 = vcmask 1043456  }
  0xad   : > { %vm1661_vm5 = vmand %vm4726_vm12, %vm1597_vm3  ;;  %vm1607_vm3 = vcmp.eq.s32.totalorder %v4023_v15, %v3971_v3 }
  0xae   : > { %1170 = vmatpush1.bf16.msra.mxu1 %v3890_v1  ;;  %vm1663_vm6 = vmand %vm4726_vm12, %vm1599_vm8 }
  0xaf   : > { %1817 = vmatprep.subr.bf16.mxu1 %v3890_v1  ;;  %vm3539_vm2 = vmpackc.low %vm1663_vm6, %vm1661_vm5  ;;  %vm6099_vm5 = vcmask 64512  }
  0xb0   : > { %vm1665_vm14 = vmand %vm4726_vm12, %vm1601_vm4  ;;  %vm1609_vm4 = vcmp.eq.s32.totalorder %v4030_v16, %v3971_v3 }
  0xb1   : > { %1172 = vmatmul.mubr.bf16.vlgmr.msra.gmra.mrb[4].mxu1 %v4375_v0  ;;  %vm1667_vm0 = vmand %vm4726_vm12, %vm1603_vm9  ;;  %vm1611_vm9 = vcmp.eq.s32.totalorder %v4038_v17, %v3971_v3 }
  0xb2   : > { %1849 = vmatprep.mubr.bf16.mxu1 %v4094_v27  ;;  %3538 = vmatpush1.bf16.msk.msra.mxu1 %vm3537_vm13, %v3891_v13  ;;  %vm3541_vm15 = vmpackc.low %vm1667_vm0, %vm1665_vm14  ;;  %vm1605_vm13 = vcmp.eq.s32.totalorder %v4015_v14, %v3971_v3 }
  0xb3   : > { %1819 = vmatprep.subr.bf16.mxu1 %v3890_v1  ;;  %vm1669_vm8 = vmand %vm4726_vm12, %vm1605_vm13  ;;  %vm1613_vm13 = vcmp.eq.s32.totalorder %v4052_v19, %v3971_v3 }
  0xb4   : > { %vm1671_vm6 = vmand %vm4726_vm12, %vm1607_vm3  ;;  %vm1615_vm3 = vcmp.eq.s32.totalorder %v4063_v21, %v3971_v3 }
  0xb5   : > { %vm1673_vm14 = vmand %vm4726_vm12, %vm1609_vm4  ;;  %vm1617_vm4 = vcmp.eq.s32.totalorder %v4079_v24, %v3971_v3 }
  0xb6   : > { %3540 = vmatpush1.bf16.msk.msra.mxu1 %vm3539_vm2, %v3891_v13  ;;  %vm3543_vm2 = vmpackc.low %vm1671_vm6, %vm1669_vm8 }
  0xb7   : > { %1821 = vmatprep.subr.bf16.mxu1 %v3890_v1  ;;  %vm1675_vm0 = vmand %vm4726_vm12, %vm1611_vm9  ;;  %vm1619_vm9 = vcmp.eq.s32.totalorder %v4090_v26, %v3971_v3 }
  0xb8   : > { %vm1677_vm8 = vmand %vm4726_vm12, %vm1613_vm13  ;;  %vm1621_vm13 = vcmp.eq.s32.totalorder %v4120_v31, %v3971_v3 }
  0xb9   : > { %vm1679_vm6 = vmand %vm4726_vm12, %vm1615_vm3  ;;  %vm1623_vm3 = vcmp.eq.s32.totalorder %v4135_v34, %v3971_v3 }
  0xba   : > { %3542 = vmatpush1.bf16.msk.msra.mxu1 %vm3541_vm15, %v3891_v13  ;;  %vm3545_vm15 = vmpackc.low %vm1675_vm0, %vm1673_vm14 }
  0xbb   : > { %1823 = vmatprep.subr.bf16.mxu1 %v3890_v1  ;;  %vm1681_vm14 = vmand %vm4726_vm12, %vm1617_vm4  ;;  %vm1249_vm4 = vcmp.lt.s32.totalorder %v4073_v23, 16 }
  0xbc   : > { %vm1683_vm0 = vmand %vm4726_vm12, %vm1619_vm9 }
  0xbe   : > { %3544 = vmatpush1.bf16.msk.msra.mxu1 %vm3543_vm2, %v3891_v13  ;;  %vm3547_vm2 = vmpackc.low %vm1679_vm6, %vm1677_vm8 }
  0xbf   : > { %1825 = vmatprep.subr.bf16.mxu1 %v3890_v1  ;;  %vm1685_vm8 = vmand %vm4726_vm12, %vm1621_vm13 }
  0xc0   : > { %vm1687_vm6 = vmand %vm4726_vm12, %vm1623_vm3 }
  0xc1   : > { %vm3551_vm9 = vmpackc.low %vm1687_vm6, %vm1685_vm8  ;;  %vm1630_vm8 = vcmp.eq.s32.totalorder %v4181_v40, %v4041_v18  ;;  %vm1632_vm6 = vcmp.eq.s32.totalorder %v4186_v41, %v4041_v18 }
  0xc2   : > { %3546 = vmatpush1.bf16.msk.msra.mxu1 %vm3545_vm15, %v3891_v13  ;;  %vm3549_vm15 = vmpackc.low %vm1683_vm0, %vm1681_vm14  ;;  %vm1626_vm14 = vcmp.eq.s32.totalorder %v4165_v37, %v4041_v18  ;;  %vm1628_vm0 = vcmp.eq.s32.totalorder %v4172_v39, %v4041_v18 }
  0xc3   : > { %1827 = vmatprep.subr.bf16.mxu1 %v3890_v1 }
  0xc6   : > { %3548 = vmatpush1.bf16.msk.msra.mxu1 %vm3547_vm2, %v3891_v13  ;;  %vm1247_vm2 = vcmp.ge.s32.totalorder %v4073_v23, 0 }
  0xc7   : > { %1829 = vmatprep.subr.bf16.mxu1 %v3890_v1 }
  0xca   : > { %3550 = vmatpush1.bf16.msk.msra.mxu1 %vm3549_vm15, %v3891_v13  ;;  %vm4818_vm15 = vmand %vm1247_vm2, %vm1249_vm4 }
  0xcb   : > { %1831 = vmatprep.subr.bf16.mxu1 %v3890_v1  ;;  %vm1690_vm13 = vmand %vm4818_vm15, %vm1626_vm14  ;;  %vm1636_vm14 = vcmp.eq.s32.totalorder %v4200_v43, %v4041_v18 }
  0xcc   : > { %vm1692_vm3 = vmand %vm4818_vm15, %vm1628_vm0 }
  0xcd   : > { %vm3553_vm1 = vmpackc.low %vm1692_vm3, %vm1690_vm13 }
  0xce   : > { %3552 = vmatpush1.bf16.msk.msra.mxu1 %vm3551_vm9, %v3891_v13  ;;  %vm1694_vm2 = vmand %vm4818_vm15, %vm1630_vm8  ;;  %vm1638_vm8 = vcmp.eq.s32.totalorder %v4207_v44, %v4041_v18 }
  0xcf   : > { %3554 = vmatprep.subr.msk.bf16.mxu1 %vm3553_vm1, %v3891_v13  ;;  %vm1696_vm4 = vmand %vm4818_vm15, %vm1632_vm6  ;;  %vm1634_vm1 = vcmp.eq.s32.totalorder %v4192_v42, %v4041_v18  ;;  %vm1640_vm6 = vcmp.eq.s32.totalorder %v4219_v46, %v4041_v18 }
  0xd0   : > { %vm3555_vm9 = vmpackc.low %vm1696_vm4, %vm1694_vm2 }
  0xd1   : > { %vm1698_vm0 = vmand %vm4818_vm15, %vm1634_vm1  ;;  %vm1642_vm1 = vcmp.eq.s32.totalorder %v4230_v48, %v4041_v18 }
  0xd2   : > { %1834 = vmatpush1.bf16.msra.mxu1 %v3890_v1  ;;  %vm1700_vm13 = vmand %vm4818_vm15, %vm1636_vm14  ;;  %vm1644_vm14 = vcmp.eq.s32.totalorder %v4241_v50, %v4041_v18 }
  0xd3   : > { %3556 = vmatprep.subr.msk.bf16.mxu1 %vm3555_vm9, %v3891_v13  ;;  %vm3557_vm3 = vmpackc.low %vm1700_vm13, %vm1698_vm0 }
  0xd4   : > { %vm1702_vm2 = vmand %vm4818_vm15, %vm1638_vm8  ;;  %vm1646_vm8 = vcmp.eq.s32.totalorder %v4308_v57, %v4041_v18 }
  0xd5   : > { %vm1704_vm4 = vmand %vm4818_vm15, %vm1640_vm6  ;;  %vm1648_vm6 = vcmp.eq.s32.totalorder %v4313_v59, %v4041_v18 }
  0xd6   : > { %1836 = vmatpush1.bf16.msra.mxu1 %v3890_v1  ;;  %vm3559_vm9 = vmpackc.low %vm1704_vm4, %vm1702_vm2  ;;  %vm1650_vm4 = vcmp.eq.s32.totalorder %v4326_v60, %v4041_v18 }
  0xd7   : > { %3558 = vmatprep.subr.msk.bf16.mxu1 %vm3557_vm3, %v3891_v13  ;;  %vm1706_vm0 = vmand %vm4818_vm15, %vm1642_vm1  ;;  %vm1652_vm1 = vcmp.eq.s32.totalorder %v4333_v61, %v4041_v18 }
  0xd8   : > { %vm1708_vm13 = vmand %vm4818_vm15, %vm1644_vm14 }
  0xd9   : > { %vm3561_vm3 = vmpackc.low %vm1708_vm13, %vm1706_vm0  ;;  %vm1654_vm13 = vcmp.eq.s32.totalorder %v4687_v35, %v4041_v18 }
  0xda   : > { %1838 = vmatpush1.bf16.msra.mxu1 %v3890_v1  ;;  %vm1710_vm2 = vmand %vm4818_vm15, %vm1646_vm8  ;;  %vm1656_vm8 = vcmp.eq.s32.totalorder %v4881_v63, %v4041_v18 }
  0xdb   : > { %3560 = vmatprep.subr.msk.bf16.mxu1 %vm3559_vm9, %v3891_v13  ;;  %vm1712_vm9 = vmand %vm4818_vm15, %vm1648_vm6 }
  0xdc   : > { %vm3563_vm14 = vmpackc.low %vm1712_vm9, %vm1710_vm2 }
  0xdd   : > { %vm1714_vm0 = vmand %vm4818_vm15, %vm1650_vm4 }
  0xde   : > { %1840 = vmatpush1.bf16.msra.mxu1 %v3890_v1  ;;  %vm1718_vm2 = vmand %vm4818_vm15, %vm1654_vm13 }
  0xdf   : > { %3562 = vmatprep.subr.msk.bf16.mxu1 %vm3561_vm3, %v3891_v13  ;;  %vm1716_vm3 = vmand %vm4818_vm15, %vm1652_vm1 }
  0xe0   : > { %vm3565_vm6 = vmpackc.low %vm1716_vm3, %vm1714_vm0 }
  0xe1   : > { %vm1720_vm4 = vmand %vm4818_vm15, %vm1656_vm8 }
  0xe2   : > { %1842 = vmatpush1.bf16.msra.mxu1 %v3890_v1  ;;  %vm3567_vm9 = vmpackc.low %vm1720_vm4, %vm1718_vm2 }
  0xe3   : > { %3564 = vmatprep.subr.msk.bf16.mxu1 %vm3563_vm14, %v3891_v13  ;;  %vm4918_vm1 = vmand %vm4726_vm12, %vm6101_vm10 }
  0xe6   : > { %1844 = vmatpush1.bf16.msra.mxu1 %v3890_v1 }
  0xe7   : > { %3566 = vmatprep.subr.msk.bf16.mxu1 %vm3565_vm6, %v3891_v13 }
  0xea   : > { %1846 = vmatpush1.bf16.msra.mxu1 %v3890_v1 }
  0xeb   : > { %3568 = vmatprep.subr.msk.bf16.mxu1 %vm3567_vm9, %v3891_v13 }
  0xee   : > { %1848 = vmatpush1.bf16.msra.mxu1 %v3890_v1 }
  0xef   : > { %2499 = vmatprep.subr.bf16.mxu1 %v3890_v1 }
  0xf1   : > { %1850 = vmatmul.mubr.bf16.vlgmr.msra.gmra.mrb[8].mxu1 %v4375_v0 }
  0xf2   : > { %2531 = vmatprep.mubr.bf16.mxu1 %v4094_v27 }
 0x128   : > { %v775_v45 = vpop.f32.mrb[0].mxu1 }
 0x129   : > { %v782_v47 = vpack.c.bf16 %v775_v45, %v775_v45  ;;  %v777_v49 = vpop.f32.mrb[1].mxu1  ;;  %v3818_v45 = vld [vmem:[%s6093_s1] sm:$0xff]  }
 0x12a   : > { %v783_v52 = vpack.c.bf16 %v777_v49, %v777_v49  ;;  %v779_v53 = vpop.f32.mrb[2].mxu1 }
 0x12b   : > { %v798_v54 = vsel %vm6100_vm11, %v782_v47, 0  ;;  %v780_v55 = vpop.f32.mrb[3].mxu1  ;;  %v4911_v47 = vadd.s32 4294967295, %v3971_v3 }
 0x12c   : > { %3451 = vmatprep.subr.msk.bf16.mxu0 %vm6100_vm11, %v783_v52 }
 0x12d   : > { %804 = vmatpush1.bf16.msra.mxu0 %v798_v54  ;;  %vm1258_vm14 = vcmp.eq.s32.totalorder %v3969_v2, %v4911_v47  ;;  %vm1260_vm0 = vcmp.eq.s32.totalorder %v3974_v4, %v4911_v47  ;;  %vm1262_vm8 = vcmp.eq.s32.totalorder %v3987_v8, %v4911_v47  ;;  %vm1264_vm6 = vcmp.eq.s32.totalorder %v3990_v9, %v4911_v47 }
 0x12e   : > { %vm4928_vm13 = vmand %vm4918_vm1, %vm1258_vm14  ;;  %vm1266_vm4 = vcmp.eq.s32.totalorder %v4001_v11, %v4911_v47  ;;  %vm1268_vm14 = vcmp.eq.s32.totalorder %v4009_v12, %v4911_v47 }
 0x12f   : > { %vm4934_vm3 = vmand %vm4918_vm1, %vm1260_vm0 }
 0x130   : > { %3452 = vmatmul.mubr.msk.bf16.vlgmr.msra.gmra.mrb[4].mxu0 %vm6099_vm5, %v3817_v56  ;;  %vm3497_vm2 = vmpackc.low %vm4934_vm3, %vm4928_vm13  ;;  %v5030_v56 = vadd.s32 4294967295, %v4041_v18 }
 0x131   : > { %892 = vmatprep.mubr.bf16.mxu0 %v3895_v36  ;;  %vm4955_vm9 = vmand %vm4918_vm1, %vm1262_vm8  ;;  %vm1270_vm8 = vcmp.eq.s32.totalorder %v4015_v14, %v4911_v47 }
 0x132   : > { %vm1328_vm0 = vmand %vm4918_vm1, %vm1264_vm6  ;;  %vm1291_vm10 = vcmp.eq.s32.totalorder %v4165_v37, %v5030_v56 }
 0x133   : > { %vm4966_vm13 = vmand %vm4918_vm1, %vm1266_vm4  ;;  %vm1272_vm4 = vcmp.eq.s32.totalorder %v4023_v15, %v4911_v47 }
 0x134   : > { %vm4973_vm3 = vmand %vm4918_vm1, %vm1268_vm14 }
 0x135   : > { %vm3499_vm6 = vmpackc.low %vm1328_vm0, %vm4955_vm9  ;;  %vm1276_vm9 = vcmp.eq.s32.totalorder %v4038_v17, %v4911_v47 }
 0x136   : > { %vm3501_vm14 = vmpackc.low %vm4973_vm3, %vm4966_vm13 }
 0x137   : > { %vm5003_vm0 = vmand %vm4918_vm1, %vm1272_vm4  ;;  %vm1280_vm4 = vcmp.eq.s32.totalorder %v4063_v21, %v4911_v47 }
 0x138   : > { %vm5016_vm3 = vmand %vm4918_vm1, %vm1276_vm9 }
 0x139   : > { %vm5047_vm9 = vmand %vm4918_vm1, %vm1280_vm4 }
 0x175   : > { %v496_v6 = vpop.f32.mrb[0].mxu0 }
 0x176   : > { %v503_v10 = vpack.c.bf16 %v496_v6, %v496_v6  ;;  %v498_v20 = vpop.f32.mrb[1].mxu0 }
 0x177   : > { %v504_v22 = vpack.c.bf16 %v498_v20, %v498_v20  ;;  %v500_v28 = vpop.f32.mrb[2].mxu0 }
 0x178   : > { %v855_v30 = vsel %vm6100_vm11, %v503_v10, 0  ;;  %v501_v32 = vpop.f32.mrb[3].mxu0  ;;  %v3819_v28 = vld [vmem:[%s6093_s1 + $0x10] sm:$0xff]  }
 0x179   : > { %3454 = vmatprep.subr.msk.bf16.mxu0 %vm6100_vm11, %v504_v22  ;;  %v5197_v32 = vadd.s32 15, %v3971_v3 }
 0x17a   : > { %861 = vmatpush1.bf16.msra.mxu0 %v855_v30 }
 0x17d   : > { %3455 = vmatmul.mubr.msk.bf16.vlgmr.msra.gmra.mrb[4].mxu0 %vm6099_vm5, %v3818_v45  ;;  %v5386_v45 = vadd.s32 1, %v3971_v3 }
 0x17e   : > { %1231 = vmatprep.mubr.bf16.mxu0 %v3895_v36 }
 0x184   : > { %v1173_v52 = vpop.f32.mrb[4].mxu1 }
 0x185   : > { %v1180_v54 = vpack.c.bf16 %v1173_v52, %v1173_v52  ;;  %v1175_v55 = vpop.f32.mrb[5].mxu1 }
 0x186   : > { %v1181_v6 = vpack.c.bf16 %v1175_v55, %v1175_v55  ;;  %v1177_v10 = vpop.f32.mrb[6].mxu1  ;;  %v2274_v55 = vadd.s32 15, %v4041_v18 }
 0x187   : > { %v1194_v20 = vsel %vm6100_vm11, %v1180_v54, 0  ;;  %v1178_v22 = vpop.f32.mrb[7].mxu1  ;;  %v2262_v54 = vadd.s32 1, %v4073_v23  ;;  %v6187_v23 = vmov 0 }
 0x188   : > { %3495 = vmatprep.subr.msk.bf16.mxu0 %vm6100_vm11, %v1181_v6 }
 0x189   : > { %1200 = vmatpush1.bf16.msra.mxu0 %v1194_v20 }
 0x18a   : > { %1482 = vmatprep.subr.bf16.mxu0 %v3890_v1 }
 0x18c   : > { %3496 = vmatmul.mubr.msk.bf16.vlgmr.msra.gmra.mrb[4].mxu0 %vm6099_vm5, %v3819_v28  ;;  %vm4994_vm5 = vmand %vm4918_vm1, %vm1270_vm8  ;;  %vm1278_vm8 = vcmp.eq.s32.totalorder %v4052_v19, %v4911_v47 }
 0x18d   : > { %3498 = vmatpush1.bf16.msk.msra.mxu0 %vm3497_vm2, %v3891_v13  ;;  %1514 = vmatprep.mubr.bf16.mxu0 %v4094_v27  ;;  %vm1274_vm2 = vcmp.eq.s32.totalorder %v4030_v16, %v4911_v47 }
 0x18e   : > { %1484 = vmatprep.subr.bf16.mxu0 %v3890_v1  ;;  %vm5010_vm13 = vmand %vm4918_vm1, %vm1274_vm2 }
 0x18f   : > { %vm3505_vm2 = vmpackc.low %vm5016_vm3, %vm5010_vm13  ;;  %vm6172_vm13 = vcmp.ge.s32.totalorder %v4430_v7, 0 }
 0x190   : > { %vm5058_vm3 = vmand %vm4818_vm15, %vm6172_vm13 }
 0x191   : > { %3500 = vmatpush1.bf16.msk.msra.mxu0 %vm3499_vm6, %v3891_v13  ;;  %vm3503_vm6 = vmpackc.low %vm5003_vm0, %vm4994_vm5  ;;  %vm1282_vm5 = vcmp.eq.s32.totalorder %v4079_v24, %v4911_v47  ;;  %vm1284_vm0 = vcmp.eq.s32.totalorder %v4090_v26, %v4911_v47 }
 0x192   : > { %1486 = vmatprep.subr.bf16.mxu0 %v3890_v1  ;;  %vm5067_vm4 = vmand %vm4918_vm1, %vm1282_vm5  ;;  %vm1286_vm5 = vcmp.eq.s32.totalorder %v4120_v31, %v4911_v47 }
 0x195   : > { %3502 = vmatpush1.bf16.msk.msra.mxu0 %vm3501_vm14, %v3891_v13  ;;  %vm5039_vm14 = vmand %vm4918_vm1, %vm1278_vm8  ;;  %vm1289_vm8 = vcmp.eq.s32.totalorder %v4135_v34, %v5030_v56 }
 0x196   : > { %1488 = vmatprep.subr.bf16.mxu0 %v3890_v1  ;;  %vm1353_vm13 = vmand %vm5058_vm3, %vm1289_vm8  ;;  %vm1288_vm8 = vcmp.eq.s32.totalorder %v4135_v34, %v4911_v47  ;;  %v2261_v47 = vadd.s32 1, %v3977_v5 }
 0x197   : > { %vm3507_vm11 = vmpackc.low %vm5047_vm9, %vm5039_vm14  ;;  %vm1293_vm9 = vcmp.eq.s32.totalorder %v4172_v39, %v5030_v56 }
 0x198   : > { %vm5098_vm14 = vmand %vm4918_vm1, %vm1286_vm5  ;;  %vm1295_vm5 = vcmp.eq.s32.totalorder %v4181_v40, %v5030_v56 }
 0x199   : > { %3504 = vmatpush1.bf16.msk.msra.mxu0 %vm3503_vm6, %v3891_v13  ;;  %vm5073_vm6 = vmand %vm4918_vm1, %vm1284_vm0 }
 0x19a   : > { %1490 = vmatprep.subr.bf16.mxu0 %v3890_v1  ;;  %vm3509_vm0 = vmpackc.low %vm5073_vm6, %vm5067_vm4 }
 0x19b   : > { %vm1352_vm4 = vmand %vm4918_vm1, %vm1288_vm8 }
 0x19c   : > { %vm1355_vm6 = vmand %vm5058_vm3, %vm1291_vm10  ;;  %vm1299_vm10 = vcmp.eq.s32.totalorder %v4192_v42, %v5030_v56 }
 0x19d   : > { %3506 = vmatpush1.bf16.msk.msra.mxu0 %vm3505_vm2, %v3891_v13  ;;  %vm3511_vm2 = vmpackc.low %vm1353_vm13, %vm6102_vm7 }
 0x19e   : > { %1492 = vmatprep.subr.bf16.mxu0 %v3890_v1  ;;  %vm1357_vm13 = vmand %vm5058_vm3, %vm1293_vm9  ;;  %vm1301_vm9 = vcmp.eq.s32.totalorder %v4200_v43, %v5030_v56 }
 0x19f   : > { %vm3514_vm7 = vmpackc.low %vm1352_vm4, %vm5098_vm14 }
 0x1a0   : > { %vm3516_vm1 = vmpackc.low %vm1357_vm13, %vm1355_vm6  ;;  %vm1303_vm6 = vcmp.eq.s32.totalorder %v4207_v44, %v5030_v56  ;;  %vm1305_vm13 = vcmp.eq.s32.totalorder %v4219_v46, %v5030_v56 }
 0x1a1   : > { %3508 = vmatpush1.bf16.msk.msra.mxu0 %vm3507_vm11, %v3891_v13  ;;  %vm1297_vm11 = vcmp.eq.s32.totalorder %v4186_v41, %v5030_v56  ;;  %vm1359_vm8 = vmand %vm5058_vm3, %vm1295_vm5 }
 0x1a2   : > { %1494 = vmatprep.subr.bf16.mxu0 %v3890_v1  ;;  %vm1363_vm14 = vmand %vm5058_vm3, %vm1299_vm10  ;;  %vm1309_vm10 = vcmp.eq.s32.totalorder %v4241_v50, %v5030_v56 }
 0x1a5   : > { %3510 = vmatpush1.bf16.msk.msra.mxu0 %vm3509_vm0, %v3891_v13  ;;  %vm1361_vm0 = vmand %vm5058_vm3, %vm1297_vm11 }
 0x1a6   : > { %3513 = vmatprep.subr.msk.bf16.mxu0 %vm3511_vm2, %v4456_v25  ;;  %vm1365_vm2 = vmand %vm5058_vm3, %vm1301_vm9  ;;  %vm1311_vm9 = vcmp.eq.s32.totalorder %v4308_v57, %v5030_v56 }
 0x1a7   : > { %vm3518_vm4 = vmpackc.low %vm1361_vm0, %vm1359_vm8 }
 0x1a8   : > { %vm3520_vm5 = vmpackc.low %vm1365_vm2, %vm1363_vm14  ;;  %vm1313_vm14 = vcmp.eq.s32.totalorder %v4313_v59, %v5030_v56 }
 0x1a9   : > { %3515 = vmatpush1.bf16.msk.msra.mxu0 %vm3514_vm7, %v3891_v13  ;;  %vm1367_vm7 = vmand %vm5058_vm3, %vm1303_vm6 }
 0x1aa   : > { %3517 = vmatprep.subr.msk.bf16.mxu0 %vm3516_vm1, %v3891_v13  ;;  %vm1369_vm11 = vmand %vm5058_vm3, %vm1305_vm13  ;;  %vm1307_vm1 = vcmp.eq.s32.totalorder %v4230_v48, %v5030_v56 }
 0x1ab   : > { %vm3522_vm8 = vmpackc.low %vm1369_vm11, %vm1367_vm7  ;;  %vm1317_vm7 = vcmp.eq.s32.totalorder %v4333_v61, %v5030_v56 }
 0x1ac   : > { %vm1371_vm0 = vmand %vm5058_vm3, %vm1307_vm1 }
 0x1ad   : > { %1499 = vmatpush1.bf16.msra.mxu0 %v3890_v1  ;;  %vm1373_vm2 = vmand %vm5058_vm3, %vm1309_vm10 }
 0x1ae   : > { %3519 = vmatprep.subr.msk.bf16.mxu0 %vm3518_vm4, %v3891_v13  ;;  %vm1375_vm4 = vmand %vm5058_vm3, %vm1311_vm9  ;;  %vm1321_vm9 = vcmp.eq.s32.totalorder %v4881_v63, %v5030_v56 }
 0x1af   : > { %vm1377_vm6 = vmand %vm5058_vm3, %vm1313_vm14 }
 0x1b0   : > { %vm3524_vm13 = vmpackc.low %vm1373_vm2, %vm1371_vm0 }
 0x1b1   : > { %1501 = vmatpush1.bf16.msra.mxu0 %v3890_v1  ;;  %vm3526_vm11 = vmpackc.low %vm1377_vm6, %vm1375_vm4  ;;  %vm2263_vm6 = vcmp.ge.s32.totalorder %v2261_v47, 0 }
 0x1b2   : > { %3521 = vmatprep.subr.msk.bf16.mxu0 %vm3520_vm5, %v3891_v13  ;;  %vm1315_vm5 = vcmp.eq.s32.totalorder %v4326_v60, %v5030_v56  ;;  %vm1381_vm10 = vmand %vm5058_vm3, %vm1317_vm7 }
 0x1b3   : > { %vm1379_vm1 = vmand %vm5058_vm3, %vm1315_vm5  ;;  %vm6183_vm5 = vcmp.ge.s32.totalorder %v4251_v51, 0 }
 0x1b4   : > { %vm3528_vm0 = vmpackc.low %vm1381_vm10, %vm1379_vm1  ;;  %vm6186_vm10 = vmmov 1  }
 0x1b5   : > { %1503 = vmatpush1.bf16.msra.mxu0 %v3890_v1  ;;  %vm1385_vm2 = vmand %vm5058_vm3, %vm1321_vm9  ;;  %vm2279_vm9 = vcmp.eq.s32.totalorder %v3987_v8, %v5197_v32 }
 0x1b6   : > { %3523 = vmatprep.subr.msk.bf16.mxu0 %vm3522_vm8, %v3891_v13  ;;  %vm1319_vm8 = vcmp.eq.s32.totalorder %v4687_v35, %v5030_v56 }
 0x1b7   : > { %vm1383_vm14 = vmand %vm5058_vm3, %vm1319_vm8 }
 0x1b8   : > { %vm3530_vm4 = vmpackc.low %vm1385_vm2, %vm1383_vm14 }
 0x1b9   : > { %1505 = vmatpush1.bf16.msra.mxu0 %v3890_v1 }
 0x1ba   : > { %3525 = vmatprep.subr.msk.bf16.mxu0 %vm3524_vm13, %v3891_v13  ;;  %vm2265_vm13 = vcmp.lt.s32.totalorder %v2261_v47, 16 }
 0x1bb   : > { %vm5192_vm3 = vmand %vm2263_vm6, %vm2265_vm13  ;;  %vm2283_vm6 = vcmp.eq.s32.totalorder %v4001_v11, %v5197_v32  ;;  %vm2285_vm13 = vcmp.eq.s32.totalorder %v4009_v12, %v5197_v32 }
 0x1bc   : > { %vm5203_vm7 = vmand %vm5192_vm3, %vm6183_vm5 }
 0x1bd   : > { %1507 = vmatpush1.bf16.msra.mxu0 %v3890_v1  ;;  %vm2343_vm14 = vmand %vm5203_vm7, %vm2279_vm9  ;;  %vm2289_vm9 = vcmp.eq.s32.totalorder %v4023_v15, %v5197_v32 }
 0x1be   : > { %3527 = vmatprep.subr.msk.bf16.mxu0 %vm3526_vm11, %v3891_v13  ;;  %vm2277_vm11 = vcmp.eq.s32.totalorder %v3974_v4, %v5197_v32  ;;  %vm2347_vm5 = vmand %vm5203_vm7, %vm2283_vm6  ;;  %vm2293_vm6 = vcmp.eq.s32.totalorder %v4038_v17, %v5197_v32 }
 0x1bf   : > { %vm2341_vm1 = vmand %vm5203_vm7, %vm2277_vm11 }
 0x1c0   : > { %vm3614_vm8 = vmpackc.low %vm2341_vm1, %vm6186_vm10 }
 0x1c1   : > { %1509 = vmatpush1.bf16.msra.mxu0 %v3890_v1  ;;  %3616 = vmatpush1.bf16.msk.msra.mxu1 %vm3614_vm8, %v4456_v25  ;;  %vm2349_vm11 = vmand %vm5203_vm7, %vm2285_vm13  ;;  %vm2287_vm8 = vcmp.eq.s32.totalorder %v4015_v14, %v5197_v32 }
 0x1c2   : > { %3529 = vmatprep.subr.msk.bf16.mxu0 %vm3528_vm0, %v3891_v13  ;;  %2501 = vmatprep.subr.bf16.mxu1 %v3890_v1  ;;  %vm2281_vm0 = vcmp.eq.s32.totalorder %v3990_v9, %v5197_v32  ;;  %vm3619_vm1 = vmpackc.low %vm2349_vm11, %vm2347_vm5 }
 0x1c3   : > { %vm2345_vm2 = vmand %vm5203_vm7, %vm2281_vm0 }
 0x1c4   : > { %v5230_v5 = vpop.f32.mrb[8].mxu1  ;;  %vm2351_vm0 = vmand %vm5203_vm7, %vm2287_vm8  ;;  %vm2297_vm8 = vcmp.eq.s32.totalorder %v4063_v21, %v5197_v32 }
 0x1c5   : > { %1511 = vmatpush1.bf16.msra.mxu0 %v3890_v1  ;;  %v5234_v51 = vpop.f32.mrb[9].mxu1  ;;  %vm2357_vm5 = vmand %vm5203_vm7, %vm2293_vm6  ;;  %v1858_v22 = vpack.c.bf16 %v5230_v5, %v5230_v5 }
 0x1c6   : > { %3531 = vmatprep.subr.msk.bf16.mxu0 %vm3530_vm4, %v3891_v13  ;;  %vm3617_vm4 = vmpackc.low %vm2345_vm2, %vm2343_vm14  ;;  %v1855_v52 = vpop.f32.mrb[10].mxu1  ;;  %v1859_v28 = vpack.c.bf16 %v5234_v51, %v5234_v51 }
 0x1c7   : > { %3618 = vmatpush1.bf16.msk.msra.mxu1 %vm3617_vm4, %v3891_v13  ;;  %v1856_v53 = vpop.f32.mrb[11].mxu1  ;;  %vm2353_vm14 = vmand %vm5203_vm7, %vm2289_vm9  ;;  %vm2291_vm4 = vcmp.eq.s32.totalorder %v4030_v16, %v5197_v32 }
 0x1c8   : > { %2503 = vmatprep.subr.bf16.mxu1 %v3890_v1  ;;  %vm3621_vm2 = vmpackc.low %vm2353_vm14, %vm2351_vm0 }
 0x1c9   : > { %1513 = vmatpush1.bf16.msra.mxu0 %v3890_v1  ;;  %vm2355_vm13 = vmand %vm5203_vm7, %vm2291_vm4  ;;  %vm2301_vm4 = vcmp.eq.s32.totalorder %v4090_v26, %v5197_v32 }
 0x1ca   : > { %vm3623_vm11 = vmpackc.low %vm2357_vm5, %vm2355_vm13 }
 0x1cb   : > { %3620 = vmatpush1.bf16.msk.msra.mxu1 %vm3619_vm1, %v3891_v13  ;;  %vm2295_vm1 = vcmp.eq.s32.totalorder %v4052_v19, %v5197_v32  ;;  %vm2361_vm0 = vmand %vm5203_vm7, %vm2297_vm8  ;;  %vm2264_vm8 = vcmp.ge.s32.totalorder %v2262_v54, 0 }
 0x1cc   : > { %1515 = vmatmul.mubr.bf16.vlgmr.msra.gmra.mrb[8].mxu0 %v4375_v0  ;;  %2505 = vmatprep.subr.bf16.mxu1 %v3890_v1  ;;  %vm2359_vm9 = vmand %vm5203_vm7, %vm2295_vm1  ;;  %vm2305_vm1 = vcmp.eq.s32.totalorder %v4135_v34, %v5197_v32 }
 0x1cd   : > { %1574 = vmatprep.mubr.bf16.mxu0 %v3895_v36  ;;  %vm3625_vm14 = vmpackc.low %vm2361_vm0, %vm2359_vm9  ;;  %vm2266_vm9 = vcmp.lt.s32.totalorder %v2262_v54, 16 }
 0x1ce   : > { %vm2365_vm13 = vmand %vm5203_vm7, %vm2301_vm4 }
 0x1cf   : > { %3622 = vmatpush1.bf16.msk.msra.mxu1 %vm3621_vm2, %v3891_v13  ;;  %vm2299_vm2 = vcmp.eq.s32.totalorder %v4079_v24, %v5197_v32  ;;  %vm5288_vm4 = vmand %vm2264_vm8, %vm2266_vm9  ;;  %vm2309_vm8 = vcmp.eq.s32.totalorder %v4172_v39, %v5197_v32 }
 0x1d0   : > { %2507 = vmatprep.subr.bf16.mxu1 %v3890_v1  ;;  %vm2363_vm6 = vmand %vm5203_vm7, %vm2299_vm2  ;;  %v6188_v23 = vsel %vm5288_vm4, 4294967295, %v6187_v23 }
 0x1d1   : > { %vm3627_vm5 = vmpackc.low %vm2365_vm13, %vm2363_vm6  ;;  %vm2310_vm6 = vcmp.eq.s32.totalorder %v4172_v39, %v2274_v55  ;;  %vm6189_vm13 = vcmp.ge.s32.totalorder %v4430_v7, 0 }
 0x1d3   : > { %3624 = vmatpush1.bf16.msk.msra.mxu1 %vm3623_vm11, %v3891_v13  ;;  %vm2303_vm11 = vcmp.eq.s32.totalorder %v4120_v31, %v5197_v32 }
 0x1d4   : > { %2509 = vmatprep.subr.bf16.mxu1 %v3890_v1  ;;  %vm2367_vm0 = vmand %vm5203_vm7, %vm2303_vm11  ;;  %vm2307_vm11 = vcmp.eq.s32.totalorder %v4165_v37, %v5197_v32  ;;  %v3820_v32 = vld [vmem:[%s6093_s1 + $0x18] sm:$0xff]  }
 0x1d7   : > { %3626 = vmatpush1.bf16.msk.msra.mxu1 %vm3625_vm14, %v3891_v13  ;;  %vm2369_vm14 = vmand %vm5203_vm7, %vm2305_vm1 }
 0x1d8   : > { %2511 = vmatprep.subr.bf16.mxu1 %v3890_v1  ;;  %vm3629_vm2 = vmpackc.low %vm2369_vm14, %vm2367_vm0 }
 0x1d9   : > { %vm2371_vm0 = vmand %vm5203_vm7, %vm2307_vm11  ;;  %vm2316_vm11 = vcmp.eq.s32.totalorder %v4192_v42, %v2274_v55 }
 0x1da   : > { %vm2373_vm14 = vmand %vm5203_vm7, %vm2309_vm8  ;;  %vm2318_vm7 = vcmp.eq.s32.totalorder %v4200_v43, %v2274_v55 }
 0x1db   : > { %3628 = vmatpush1.bf16.msk.msra.mxu1 %vm3627_vm5, %v3891_v13  ;;  %vm5298_vm5 = vmand %vm5288_vm4, %vm6189_vm13  ;;  %vm2312_vm13 = vcmp.eq.s32.totalorder %v4181_v40, %v2274_v55 }
 0x1dc   : > { %2513 = vmatprep.subr.bf16.mxu1 %v3890_v1  ;;  %vm2374_vm1 = vmand %vm5298_vm5, %vm2310_vm6  ;;  %vm2314_vm6 = vcmp.eq.s32.totalorder %v4186_v41, %v2274_v55 }
 0x1dd   : > { %vm3631_vm9 = vmpackc.low %vm2374_vm1, %vm6186_vm10 }
 0x1de   : > { %vm2376_vm4 = vmand %vm5298_vm5, %vm2312_vm13 }
 0x1df   : > { %3630 = vmatpush1.bf16.msk.msra.mxu1 %vm3629_vm2, %v3891_v13  ;;  %vm3634_vm2 = vmpackc.low %vm2373_vm14, %vm2371_vm0 }
 0x1e0   : > { %3633 = vmatprep.subr.msk.bf16.mxu1 %vm3631_vm9, %v4456_v25  ;;  %vm2378_vm1 = vmand %vm5298_vm5, %vm2314_vm6 }
 0x1e1   : > { %vm3636_vm9 = vmpackc.low %vm2378_vm1, %vm2376_vm4  ;;  %vm2322_vm4 = vcmp.eq.s32.totalorder %v4219_v46, %v2274_v55 }
 0x1e2   : > { %vm2380_vm8 = vmand %vm5298_vm5, %vm2316_vm11  ;;  %vm2326_vm11 = vcmp.eq.s32.totalorder %v4241_v50, %v2274_v55 }
 0x1e3   : > { %3635 = vmatpush1.bf16.msk.msra.mxu1 %vm3634_vm2, %v3891_v13  ;;  %vm2382_vm0 = vmand %vm5298_vm5, %vm2318_vm7  ;;  %vm2320_vm2 = vcmp.eq.s32.totalorder %v4207_v44, %v2274_v55 }
 0x1e4   : > { %3637 = vmatprep.subr.msk.bf16.mxu1 %vm3636_vm9, %v3891_v13  ;;  %vm3638_vm14 = vmpackc.low %vm2382_vm0, %vm2380_vm8  ;;  %vm2324_vm9 = vcmp.eq.s32.totalorder %v4230_v48, %v2274_v55 }
 0x1e5   : > { %vm2384_vm13 = vmand %vm5298_vm5, %vm2320_vm2  ;;  %vm2330_vm2 = vcmp.eq.s32.totalorder %v4313_v59, %v2274_v55 }
 0x1e6   : > { %vm2386_vm6 = vmand %vm5298_vm5, %vm2322_vm4 }
 0x1e7   : > { %2518 = vmatpush1.bf16.msra.mxu1 %v3890_v1  ;;  %vm3640_vm1 = vmpackc.low %vm2386_vm6, %vm2384_vm13  ;;  %vm2332_vm13 = vcmp.eq.s32.totalorder %v4326_v60, %v2274_v55 }
 0x1e8   : > { %3639 = vmatprep.subr.msk.bf16.mxu1 %vm3638_vm14, %v3891_v13  ;;  %vm2388_vm7 = vmand %vm5298_vm5, %vm2324_vm9  ;;  %vm2328_vm14 = vcmp.eq.s32.totalorder %v4308_v57, %v2274_v55 }
 0x1e9   : > { %vm2390_vm8 = vmand %vm5298_vm5, %vm2326_vm11 }
 0x1ea   : > { %vm3642_vm0 = vmpackc.low %vm2390_vm8, %vm2388_vm7  ;;  %vm2336_vm7 = vcmp.eq.s32.totalorder %v4687_v35, %v2274_v55 }
 0x1eb   : > { %2520 = vmatpush1.bf16.msra.mxu1 %v3890_v1  ;;  %vm2392_vm4 = vmand %vm5298_vm5, %vm2328_vm14 }
 0x1ec   : > { %3641 = vmatprep.subr.msk.bf16.mxu1 %vm3640_vm1, %v3891_v13  ;;  %vm2394_vm6 = vmand %vm5298_vm5, %vm2330_vm2  ;;  %vm2334_vm1 = vcmp.eq.s32.totalorder %v4333_v61, %v2274_v55 }
 0x1ed   : > { %vm3644_vm9 = vmpackc.low %vm2394_vm6, %vm2392_vm4 }
 0x1ee   : > { %vm2396_vm11 = vmand %vm5298_vm5, %vm2332_vm13 }
 0x1ef   : > { %2522 = vmatpush1.bf16.msra.mxu1 %v3890_v1  ;;  %vm2398_vm8 = vmand %vm5298_vm5, %vm2334_vm1 }
 0x1f0   : > { %3643 = vmatprep.subr.msk.bf16.mxu1 %vm3642_vm0, %v3891_v13  ;;  %vm2338_vm0 = vcmp.eq.s32.totalorder %v4881_v63, %v2274_v55  ;;  %vm3646_vm14 = vmpackc.low %vm2398_vm8, %vm2396_vm11  ;;  %vm6196_vm11 = vcmask 64512  }
 0x1f1   : > { %vm2400_vm2 = vmand %vm5298_vm5, %vm2336_vm7  ;;  %vm6197_vm7 = vcmp.lt.s32.totalorder %v4310_v58, 16 }
 0x1f2   : > { %vm2402_vm4 = vmand %vm5298_vm5, %vm2338_vm0  ;;  %vm6192_vm5 = vcmask 1043456   ;;  %vm1930_vm0 = vcmp.eq.s32.totalorder %v3969_v2, %v5386_v45  ;;  %v3821_v2 = vld [vmem:[%s6093_s1 + $0x20] sm:$0xff]  }
 0x1f3   : > { %2524 = vmatpush1.bf16.msra.mxu1 %v3890_v1  ;;  %vm3648_vm13 = vmpackc.low %vm2402_vm4, %vm2400_vm2  ;;  %vm1934_vm4 = vcmp.eq.s32.totalorder %v3987_v8, %v5386_v45 }
 0x1f4   : > { %3645 = vmatprep.subr.msk.bf16.mxu1 %vm3644_vm9, %v3891_v13  ;;  %vm6193_vm6 = vmmov %vm6192_vm5 }
 0x1f5   : > { %vm6194_vm1 = vmmov %vm6192_vm5 }
 0x1f6   : > { %v1872_v5 = vsel %vm6194_vm1, %v1858_v22, 0  ;;  %vm6195_vm9 = vmmov %vm6194_vm1 }
 0x1f7   : > { %2526 = vmatpush1.bf16.msra.mxu1 %v3890_v1  ;;  %vm5395_vm8 = vmand %vm4726_vm12, %vm6197_vm7 }
 0x1f8   : > { %3647 = vmatprep.subr.msk.bf16.mxu1 %vm3646_vm14, %v3891_v13  ;;  %vm1932_vm14 = vcmp.eq.s32.totalorder %v3974_v4, %v5386_v45  ;;  %vm1994_vm2 = vmand %vm5395_vm8, %vm1930_vm0  ;;  %vm6204_vm0 = vcmask 64512  }
 0x1f9   : > { %vm1996_vm12 = vmand %vm5395_vm8, %vm1932_vm14 }
 0x1fa   : > { %vm5420_vm1 = vmand %vm5395_vm8, %vm1934_vm4  ;;  %vm1944_vm4 = vcmp.eq.s32.totalorder %v4023_v15, %v5386_v45 }
 0x1fb   : > { %2528 = vmatpush1.bf16.msra.mxu1 %v3890_v1 }
 0x1fc   : > { %3649 = vmatprep.subr.msk.bf16.mxu1 %vm3648_vm13, %v3891_v13  ;;  %vm1936_vm13 = vcmp.eq.s32.totalorder %v3990_v9, %v5386_v45 }
 0x1ff   : > { %2530 = vmatpush1.bf16.msra.mxu1 %v3890_v1 }
 0x200   : > { %3173 = vmatprep.subr.bf16.mxu1 %v3890_v1 }
 0x202   : > { %2532 = vmatmul.mubr.bf16.vlgmr.msra.gmra.mrb[12].mxu1 %v4375_v0 }
 0x203   : > { %3174 = vmatpush1.bf16.msra.mxu1 %v3890_v1  ;;  %3205 = vmatprep.mubr.bf16.mxu1 %v4094_v27 }
 0x204   : > { %3175 = vmatprep.subr.bf16.mxu1 %v3890_v1 }
 0x29f   : > { %v1516_v7 = vpop.f32.mrb[8].mxu0 }
 0x2a0   : > { %v1523_v25 = vpack.c.bf16 %v1516_v7, %v1516_v7  ;;  %v1518_v6 = vpop.f32.mrb[9].mxu0 }
 0x2a1   : > { %v1524_v10 = vpack.c.bf16 %v1518_v6, %v1518_v6  ;;  %v1520_v20 = vpop.f32.mrb[10].mxu0 }
 0x2a2   : > { %v1537_v30 = vsel %vm6192_vm5, %v1523_v25, 0  ;;  %v1521_v47 = vpop.f32.mrb[11].mxu0  ;;  %vm3574_vm5 = vmpackc.low %vm1996_vm12, %vm1994_vm2  ;;  %vm1942_vm2 = vcmp.eq.s32.totalorder %v4015_v14, %v5386_v45  ;;  %v3822_v25 = vld [vmem:[%s6093_s1 + $0x28] sm:$0xff]   ;;  %v3823_v20 = vld [vmem:[%s6093_s1 + $0x30] sm:$0xff]  }
 0x2a3   : > { %3535 = vmatprep.subr.msk.bf16.mxu0 %vm6193_vm6, %v1524_v10  ;;  %vm1938_vm6 = vcmp.eq.s32.totalorder %v4001_v11, %v5386_v45  ;;  %v5523_v10 = vadd.s32 1, %v4041_v18  ;;  %v5673_v47 = vadd.s32 17, %v3971_v3 }
 0x2a4   : > { %1543 = vmatpush1.bf16.msra.mxu0 %v1537_v30  ;;  %vm5430_vm7 = vmand %vm5395_vm8, %vm1938_vm6 }
 0x2a5   : > { %3572 = vmatprep.subr.msk.bf16.mxu0 %vm6195_vm9, %v1859_v28  ;;  %vm1940_vm9 = vcmp.eq.s32.totalorder %v4009_v12, %v5386_v45  ;;  %vm5458_vm6 = vmand %vm5395_vm8, %vm1942_vm2  ;;  %vm1952_vm2 = vcmp.eq.s32.totalorder %v4063_v21, %v5386_v45 }
 0x2a6   : > { %vm5437_vm14 = vmand %vm5395_vm8, %vm1940_vm9 }
 0x2a7   : > { %3536 = vmatmul.mubr.msk.bf16.vlgmr.msra.gmra.mrb[4].mxu0 %vm6196_vm11, %v3820_v32  ;;  %vm2000_vm11 = vmand %vm5395_vm8, %vm1936_vm13 }
 0x2a8   : > { %1878 = vmatpush1.bf16.msra.mxu0 %v1872_v5  ;;  %1909 = vmatprep.mubr.bf16.mxu0 %v3895_v36  ;;  %vm3576_vm12 = vmpackc.low %vm2000_vm11, %vm5420_vm1  ;;  %vm1948_vm1 = vcmp.eq.s32.totalorder %v4038_v17, %v5386_v45 }
 0x2a9   : > { %2154 = vmatprep.subr.bf16.mxu0 %v3890_v1  ;;  %vm3578_vm13 = vmpackc.low %vm5437_vm14, %vm5430_vm7 }
 0x2aa   : > { %vm2008_vm9 = vmand %vm5395_vm8, %vm1944_vm4  ;;  %vm1954_vm4 = vcmp.eq.s32.totalorder %v4079_v24, %v5386_v45 }
 0x2ab   : > { %vm5476_vm7 = vmand %vm5395_vm8, %vm1948_vm1 }
 0x2ac   : > { %vm3580_vm14 = vmpackc.low %vm2008_vm9, %vm5458_vm6 }
 0x2ad   : > { %vm5504_vm6 = vmand %vm5395_vm8, %vm1952_vm2  ;;  %vm6221_vm2 = vcmp.lt.s32.totalorder %v4534_v29, 16 }
 0x2ae   : > { %vm5511_vm1 = vmand %vm5395_vm8, %vm1954_vm4 }
 0x2af   : > { %vm5543_vm4 = vmand %vm4818_vm15, %vm6221_vm2  ;;  %vm1962_vm15 = vcmp.eq.s32.totalorder %v4165_v37, %v5386_v45 }
 0x2b3   : > { %3573 = vmatmul.mubr.msk.bf16.vlgmr.msra.gmra.mrb[4].mxu0 %vm6204_vm0, %v3821_v2  ;;  %vm1950_vm0 = vcmp.eq.s32.totalorder %v4052_v19, %v5386_v45  ;;  %v2948_v2 = vadd.s32 17, %v4041_v18 }
 0x2b4   : > { %3575 = vmatpush1.bf16.msk.msra.mxu0 %vm3574_vm5, %v3891_v13  ;;  %2186 = vmatprep.mubr.bf16.mxu0 %v4094_v27  ;;  %vm1946_vm5 = vcmp.eq.s32.totalorder %v4030_v16, %v5386_v45 }
 0x2b5   : > { %2156 = vmatprep.subr.bf16.mxu0 %v3890_v1  ;;  %vm5470_vm11 = vmand %vm5395_vm8, %vm1946_vm5 }
 0x2b6   : > { %vm5496_vm5 = vmand %vm5395_vm8, %vm1950_vm0 }
 0x2b8   : > { %3577 = vmatpush1.bf16.msk.msra.mxu0 %vm3576_vm12, %v3891_v13  ;;  %vm3582_vm12 = vmpackc.low %vm5476_vm7, %vm5470_vm11  ;;  %vm1958_vm7 = vcmp.eq.s32.totalorder %v4120_v31, %v5386_v45 }
 0x2b9   : > { %2158 = vmatprep.subr.bf16.mxu0 %v3890_v1  ;;  %vm3584_vm11 = vmpackc.low %vm5504_vm6, %vm5496_vm5 }
 0x2ba   : > { %vm5551_vm5 = vmand %vm5395_vm8, %vm1958_vm7 }
 0x2bc   : > { %3579 = vmatpush1.bf16.msk.msra.mxu0 %vm3578_vm13, %v3891_v13  ;;  %vm1956_vm13 = vcmp.eq.s32.totalorder %v4090_v26, %v5386_v45 }
 0x2bd   : > { %2160 = vmatprep.subr.bf16.mxu0 %v3890_v1  ;;  %vm5518_vm9 = vmand %vm5395_vm8, %vm1956_vm13  ;;  %vm1965_vm13 = vcmp.eq.s32.totalorder %v4172_v39, %v5523_v10 }
 0x2be   : > { %vm3586_vm0 = vmpackc.low %vm5518_vm9, %vm5511_vm1  ;;  %vm1973_vm1 = vcmp.eq.s32.totalorder %v4200_v43, %v5523_v10 }
 0x2bf   : > { %vm5575_vm2 = vmand %vm5543_vm4, %vm1965_vm13  ;;  %vm1969_vm13 = vcmp.eq.s32.totalorder %v4186_v41, %v5523_v10 }
 0x2c0   : > { %3581 = vmatpush1.bf16.msk.msra.mxu0 %vm3580_vm14, %v3891_v13  ;;  %vm1960_vm14 = vcmp.eq.s32.totalorder %v4135_v34, %v5386_v45  ;;  %vm2033_vm9 = vmand %vm5543_vm4, %vm1969_vm13 }
 0x2c1   : > { %2162 = vmatprep.subr.bf16.mxu0 %v3890_v1  ;;  %vm5559_vm6 = vmand %vm5395_vm8, %vm1960_vm14 }
 0x2c2   : > { %vm2026_vm14 = vmand %vm5395_vm8, %vm1962_vm15 }
 0x2c4   : > { %3583 = vmatpush1.bf16.msk.msra.mxu0 %vm3582_vm12, %v3891_v13  ;;  %vm1963_vm12 = vcmp.eq.s32.totalorder %v4165_v37, %v5523_v10 }
 0x2c5   : > { %2164 = vmatprep.subr.bf16.mxu0 %v3890_v1  ;;  %vm5568_vm7 = vmand %vm5543_vm4, %vm1963_vm12  ;;  %vm1967_vm12 = vcmp.eq.s32.totalorder %v4181_v40, %v5523_v10 }
 0x2c6   : > { %vm3590_vm8 = vmpackc.low %vm5575_vm2, %vm5568_vm7 }
 0x2c7   : > { %vm2031_vm15 = vmand %vm5543_vm4, %vm1967_vm12  ;;  %vm1977_vm12 = vcmp.eq.s32.totalorder %v4219_v46, %v5523_v10 }
 0x2c8   : > { %3585 = vmatpush1.bf16.msk.msra.mxu0 %vm3584_vm11, %v3891_v13  ;;  %vm3588_vm11 = vmpackc.low %vm5559_vm6, %vm5551_vm5  ;;  %vm1971_vm6 = vcmp.eq.s32.totalorder %v4192_v42, %v5523_v10 }
 0x2c9   : > { %2166 = vmatprep.subr.bf16.mxu0 %v3890_v1  ;;  %vm3592_vm5 = vmpackc.low %vm6186_vm10, %vm2026_vm14  ;;  %vm1975_vm14 = vcmp.eq.s32.totalorder %v4207_v44, %v5523_v10 }
 0x2ca   : > { %vm2037_vm7 = vmand %vm5543_vm4, %vm1973_vm1  ;;  %vm1983_vm1 = vcmp.eq.s32.totalorder %v4308_v57, %v5523_v10 }
 0x2cb   : > { %vm3595_vm2 = vmpackc.low %vm2033_vm9, %vm2031_vm15  ;;  %vm1981_vm15 = vcmp.eq.s32.totalorder %v4241_v50, %v5523_v10 }
 0x2cc   : > { %3587 = vmatpush1.bf16.msk.msra.mxu0 %vm3586_vm0, %v3891_v13  ;;  %vm2035_vm0 = vmand %vm5543_vm4, %vm1971_vm6  ;;  %vm1979_vm6 = vcmp.eq.s32.totalorder %v4230_v48, %v5523_v10 }
 0x2cd   : > { %2168 = vmatprep.subr.bf16.mxu0 %v3890_v1  ;;  %vm3597_vm13 = vmpackc.low %vm2037_vm7, %vm2035_vm0  ;;  %vm1985_vm0 = vcmp.eq.s32.totalorder %v4313_v59, %v5523_v10 }
 0x2ce   : > { %vm2043_vm9 = vmand %vm5543_vm4, %vm1979_vm6 }
 0x2cf   : > { %vm2045_vm7 = vmand %vm5543_vm4, %vm1981_vm15 }
 0x2d0   : > { %3589 = vmatpush1.bf16.msk.msra.mxu0 %vm3588_vm11, %v3891_v13  ;;  %vm2039_vm11 = vmand %vm5543_vm4, %vm1975_vm14 }
 0x2d1   : > { %3591 = vmatprep.subr.msk.bf16.mxu0 %vm3590_vm8, %v3891_v13  ;;  %vm2041_vm8 = vmand %vm5543_vm4, %vm1977_vm12 }
 0x2d2   : > { %vm2049_vm14 = vmand %vm5543_vm4, %vm1985_vm0 }
 0x2d3   : > { %vm3601_vm12 = vmpackc.low %vm2045_vm7, %vm2043_vm9 }
 0x2d4   : > { %3594 = vmatpush1.bf16.msk.msra.mxu0 %vm3592_vm5, %v4584_v33  ;;  %vm3599_vm5 = vmpackc.low %vm2041_vm8, %vm2039_vm11  ;;  %vm1989_vm11 = vcmp.eq.s32.totalorder %v4333_v61, %v5523_v10 }
 0x2d5   : > { %3596 = vmatprep.subr.msk.bf16.mxu0 %vm3595_vm2, %v3891_v13  ;;  %vm2047_vm2 = vmand %vm5543_vm4, %vm1983_vm1  ;;  %vm1993_vm1 = vcmp.eq.s32.totalorder %v4881_v63, %v5523_v10 }
 0x2d6   : > { %vm3603_vm8 = vmpackc.low %vm2049_vm14, %vm2047_vm2 }
 0x2d7   : > { %vm2053_vm15 = vmand %vm5543_vm4, %vm1989_vm11 }
 0x2d8   : > { %2173 = vmatpush1.bf16.msra.mxu0 %v3890_v1  ;;  %vm2057_vm7 = vmand %vm5543_vm4, %vm1993_vm1 }
 0x2d9   : > { %3598 = vmatprep.subr.msk.bf16.mxu0 %vm3597_vm13, %v3891_v13  ;;  %vm1987_vm13 = vcmp.eq.s32.totalorder %v4326_v60, %v5523_v10 }
 0x2da   : > { %vm2051_vm6 = vmand %vm5543_vm4, %vm1987_vm13  ;;  %vm2955_vm13 = vcmp.eq.s32.totalorder %v3990_v9, %v5673_v47 }
 0x2db   : > { %vm3605_vm9 = vmpackc.low %vm2053_vm15, %vm2051_vm6  ;;  %vm2957_vm15 = vcmp.eq.s32.totalorder %v4001_v11, %v5673_v47 }
 0x2dc   : > { %2175 = vmatpush1.bf16.msra.mxu0 %v3890_v1 }
 0x2dd   : > { %3600 = vmatprep.subr.msk.bf16.mxu0 %vm3599_vm5, %v3891_v13  ;;  %vm1991_vm5 = vcmp.eq.s32.totalorder %v4687_v35, %v5523_v10  ;;  %v2610_v10 = vadd.s32 16, %v3971_v3 }
 0x2de   : > { %vm2055_vm0 = vmand %vm5543_vm4, %vm1991_vm5  ;;  %vm6232_vm4 = vcmp.lt.s32.totalorder %v4310_v58, 16  ;;  %vm2959_vm5 = vcmp.eq.s32.totalorder %v4009_v12, %v5673_v47  ;;  %v5704_v58 = vpop.f32.mrb[12].mxu1 }
 0x2df   : > { %vm3607_vm2 = vmpackc.low %vm2057_vm7, %vm2055_vm0  ;;  %vm2961_vm7 = vcmp.eq.s32.totalorder %v4015_v14, %v5673_v47  ;;  %v5709_v45 = vpop.f32.mrb[13].mxu1  ;;  %v2540_v54 = vpack.c.bf16 %v5704_v58, %v5704_v58 }
 0x2e0   : > { %2177 = vmatpush1.bf16.msra.mxu0 %v3890_v1  ;;  %vm5679_vm14 = vmand %vm5192_vm3, %vm6232_vm4  ;;  %v2537_v5 = vpop.f32.mrb[14].mxu1  ;;  %v2541_v55 = vpack.c.bf16 %v5709_v45, %v5709_v45 }
 0x2e1   : > { %3602 = vmatprep.subr.msk.bf16.mxu0 %vm3601_vm12, %v3891_v13  ;;  %vm2953_vm12 = vcmp.eq.s32.totalorder %v3987_v8, %v5673_v47  ;;  %vm3021_vm1 = vmand %vm5679_vm14, %vm2957_vm15  ;;  %v2538_v51 = vpop.f32.mrb[15].mxu1 }
 0x2e2   : > { %vm3017_vm11 = vmand %vm5679_vm14, %vm2953_vm12 }
 0x2e3   : > { %vm3025_vm4 = vmand %vm5679_vm14, %vm2961_vm7 }
 0x2e4   : > { %2179 = vmatpush1.bf16.msra.mxu0 %v3890_v1 }
 0x2e5   : > { %3604 = vmatprep.subr.msk.bf16.mxu0 %vm3603_vm8, %v3891_v13  ;;  %vm3019_vm8 = vmand %vm5679_vm14, %vm2955_vm13 }
 0x2e6   : > { %vm3690_vm6 = vmpackc.low %vm3019_vm8, %vm3017_vm11  ;;  %vm2965_vm11 = vcmp.eq.s32.totalorder %v4030_v16, %v5673_v47  ;;  %vm2967_vm8 = vcmp.eq.s32.totalorder %v4038_v17, %v5673_v47 }
 0x2e7   : > { %3691 = vmatpush1.bf16.msk.msra.mxu1 %vm3690_vm6, %v3891_v13  ;;  %vm3029_vm6 = vmand %vm5679_vm14, %vm2965_vm11 }
 0x2e8   : > { %2181 = vmatpush1.bf16.msra.mxu0 %v3890_v1  ;;  %3177 = vmatprep.subr.bf16.mxu1 %v3890_v1  ;;  %vm3031_vm15 = vmand %vm5679_vm14, %vm2967_vm8 }
 0x2e9   : > { %3606 = vmatprep.subr.msk.bf16.mxu0 %vm3605_vm9, %v3891_v13  ;;  %vm3023_vm9 = vmand %vm5679_vm14, %vm2959_vm5 }
 0x2ea   : > { %vm3692_vm0 = vmpackc.low %vm3023_vm9, %vm3021_vm1  ;;  %vm2969_vm1 = vcmp.eq.s32.totalorder %v4052_v19, %v5673_v47  ;;  %vm2971_vm9 = vcmp.eq.s32.totalorder %v4063_v21, %v5673_v47 }
 0x2eb   : > { %3693 = vmatpush1.bf16.msk.msra.mxu1 %vm3692_vm0, %v3891_v13  ;;  %vm3696_vm5 = vmpackc.low %vm3031_vm15, %vm3029_vm6  ;;  %vm2977_vm6 = vcmp.eq.s32.totalorder %v4120_v31, %v5673_v47  ;;  %vm2979_vm15 = vcmp.eq.s32.totalorder %v4135_v34, %v5673_v47 }
 0x2ec   : > { %2183 = vmatpush1.bf16.msra.mxu0 %v3890_v1  ;;  %3179 = vmatprep.subr.bf16.mxu1 %v3890_v1  ;;  %vm3033_vm0 = vmand %vm5679_vm14, %vm2969_vm1 }
 0x2ed   : > { %3608 = vmatprep.subr.msk.bf16.mxu0 %vm3607_vm2, %v3891_v13  ;;  %vm2963_vm2 = vcmp.eq.s32.totalorder %v4023_v15, %v5673_v47  ;;  %vm3035_vm7 = vmand %vm5679_vm14, %vm2971_vm9 }
 0x2ee   : > { %vm3027_vm12 = vmand %vm5679_vm14, %vm2963_vm2 }
 0x2ef   : > { %vm3694_vm13 = vmpackc.low %vm3027_vm12, %vm3025_vm4  ;;  %vm2973_vm4 = vcmp.eq.s32.totalorder %v4079_v24, %v5673_v47  ;;  %vm2975_vm12 = vcmp.eq.s32.totalorder %v4090_v26, %v5673_v47 }
 0x2f0   : > { %2185 = vmatpush1.bf16.msra.mxu0 %v3890_v1  ;;  %3695 = vmatpush1.bf16.msk.msra.mxu1 %vm3694_vm13, %v3891_v13  ;;  %vm3698_vm2 = vmpackc.low %vm3035_vm7, %vm3033_vm0  ;;  %vm2981_vm0 = vcmp.eq.s32.totalorder %v4165_v37, %v5673_v47  ;;  %vm2983_vm7 = vcmp.eq.s32.totalorder %v4172_v39, %v5673_v47 }
 0x2f1   : > { %3181 = vmatprep.subr.bf16.mxu1 %v3890_v1  ;;  %vm3037_vm13 = vmand %vm5679_vm14, %vm2973_vm4 }
 0x2f2   : > { %vm3039_vm11 = vmand %vm5679_vm14, %vm2975_vm12 }
 0x2f3   : > { %2187 = vmatmul.mubr.bf16.vlgmr.msra.gmra.mrb[12].mxu0 %v4375_v0  ;;  %vm3700_vm8 = vmpackc.low %vm3039_vm11, %vm3037_vm13  ;;  %vm2986_vm13 = vcmp.eq.s32.totalorder %v4181_v40, %v2948_v2  ;;  %vm2988_vm11 = vcmp.eq.s32.totalorder %v4186_v41, %v2948_v2 }
 0x2f4   : > { %2246 = vmatprep.mubr.bf16.mxu0 %v3895_v36  ;;  %3697 = vmatpush1.bf16.msk.msra.mxu1 %vm3696_vm5, %v3891_v13  ;;  %vm3041_vm5 = vmand %vm5679_vm14, %vm2977_vm6  ;;  %vm6236_vm6 = vnez %v6188_v23 }
 0x2f5   : > { %3183 = vmatprep.subr.bf16.mxu1 %v3890_v1  ;;  %vm3043_vm1 = vmand %vm5679_vm14, %vm2979_vm15 }
 0x2f6   : > { %vm3702_vm9 = vmpackc.low %vm3043_vm1, %vm3041_vm5  ;;  %vm2985_vm1 = vcmp.eq.s32.totalorder %v4181_v40, %v5673_v47 }
 0x2f7   : > { %vm3047_vm4 = vmand %vm5679_vm14, %vm2983_vm7 }
 0x2f8   : > { %3699 = vmatpush1.bf16.msk.msra.mxu1 %vm3698_vm2, %v3891_v13  ;;  %vm3045_vm2 = vmand %vm5679_vm14, %vm2981_vm0 }
 0x2f9   : > { %3185 = vmatprep.subr.bf16.mxu1 %v3890_v1  ;;  %vm3704_vm12 = vmpackc.low %vm3047_vm4, %vm3045_vm2  ;;  %vm2990_vm4 = vcmp.eq.s32.totalorder %v4192_v42, %v2948_v2 }
 0x2fa   : > { %vm3049_vm7 = vmand %vm5679_vm14, %vm2985_vm1 }
 0x2fb   : > { %vm3708_vm2 = vmpackc.low %vm6186_vm10, %vm3049_vm7  ;;  %vm2996_vm10 = vcmp.eq.s32.totalorder %v4219_v46, %v2948_v2  ;;  %vm3000_vm7 = vcmp.eq.s32.totalorder %v4241_v50, %v2948_v2 }
 0x2fc   : > { %3701 = vmatpush1.bf16.msk.msra.mxu1 %vm3700_vm8, %v3891_v13  ;;  %vm6235_vm8 = vcmp.lt.s32.totalorder %v4534_v29, 16 }
 0x2fd   : > { %3187 = vmatprep.subr.bf16.mxu1 %v3890_v1  ;;  %vm5773_vm15 = vmand %vm6236_vm6, %vm6235_vm8 }
 0x2fe   : > { %vm3050_vm5 = vmand %vm5773_vm15, %vm2986_vm13 }
 0x2ff   : > { %vm3054_vm13 = vmand %vm5773_vm15, %vm2990_vm4 }
 0x300   : > { %3703 = vmatpush1.bf16.msk.msra.mxu1 %vm3702_vm9, %v3891_v13  ;;  %vm3052_vm9 = vmand %vm5773_vm15, %vm2988_vm11 }
 0x301   : > { %3189 = vmatprep.subr.bf16.mxu1 %v3890_v1  ;;  %vm3706_vm0 = vmpackc.low %vm3052_vm9, %vm3050_vm5  ;;  %vm2994_vm5 = vcmp.eq.s32.totalorder %v4207_v44, %v2948_v2 }
 0x302   : > { %vm3058_vm14 = vmand %vm5773_vm15, %vm2994_vm5  ;;  %vm3006_vm5 = vcmp.eq.s32.totalorder %v4326_v60, %v2948_v2 }
 0x303   : > { %vm3060_vm1 = vmand %vm5773_vm15, %vm2996_vm10 }
 0x304   : > { %3705 = vmatpush1.bf16.msk.msra.mxu1 %vm3704_vm12, %v3891_v13  ;;  %vm2992_vm12 = vcmp.eq.s32.totalorder %v4200_v43, %v2948_v2  ;;  %vm3713_vm9 = vmpackc.low %vm3060_vm1, %vm3058_vm14  ;;  %vm3008_vm14 = vcmp.eq.s32.totalorder %v4333_v61, %v2948_v2 }
 0x305   : > { %3707 = vmatprep.subr.msk.bf16.mxu1 %vm3706_vm0, %v3891_v13  ;;  %vm3056_vm11 = vmand %vm5773_vm15, %vm2992_vm12  ;;  %vm2998_vm0 = vcmp.eq.s32.totalorder %v4230_v48, %v2948_v2 }
 0x306   : > { %vm3711_vm8 = vmpackc.low %vm3056_vm11, %vm3054_vm13  ;;  %vm3002_vm13 = vcmp.eq.s32.totalorder %v4308_v57, %v2948_v2  ;;  %vm3004_vm11 = vcmp.eq.s32.totalorder %v4313_v59, %v2948_v2 }
 0x307   : > { %vm3064_vm4 = vmand %vm5773_vm15, %vm3000_vm7 }
 0x308   : > { %3710 = vmatpush1.bf16.msk.msra.mxu1 %vm3708_vm2, %v4584_v33  ;;  %vm3062_vm2 = vmand %vm5773_vm15, %vm2998_vm0  ;;  %vm3010_vm0 = vcmp.eq.s32.totalorder %v4687_v35, %v2948_v2 }
 0x309   : > { %3712 = vmatprep.subr.msk.bf16.mxu1 %vm3711_vm8, %v3891_v13  ;;  %vm3715_vm12 = vmpackc.low %vm3064_vm4, %vm3062_vm2  ;;  %vm3012_vm2 = vcmp.eq.s32.totalorder %v4881_v63, %v2948_v2 }
 0x30a   : > { %vm3066_vm8 = vmand %vm5773_vm15, %vm3002_vm13 }
 0x30b   : > { %vm3068_vm10 = vmand %vm5773_vm15, %vm3004_vm11 }
 0x30c   : > { %3194 = vmatpush1.bf16.msra.mxu1 %v3890_v1  ;;  %vm3717_vm1 = vmpackc.low %vm3068_vm10, %vm3066_vm8 }
 0x30d   : > { %3714 = vmatprep.subr.msk.bf16.mxu1 %vm3713_vm9, %v3891_v13  ;;  %vm3070_vm9 = vmand %vm5773_vm15, %vm3006_vm5 }
 0x30e   : > { %vm3072_vm7 = vmand %vm5773_vm15, %vm3008_vm14  ;;  %vm6243_vm14 = vcmask 64512  }
 0x30f   : > { %vm3719_vm4 = vmpackc.low %vm3072_vm7, %vm3070_vm9  ;;  %vm2618_vm9 = vcmp.eq.s32.totalorder %v3990_v9, %v2610_v10 }
 0x310   : > { %3196 = vmatpush1.bf16.msra.mxu1 %v3890_v1  ;;  %vm3076_vm13 = vmand %vm5773_vm15, %vm3012_vm2  ;;  %vm2620_vm2 = vcmp.eq.s32.totalorder %v4001_v11, %v2610_v10 }
 0x311   : > { %3716 = vmatprep.subr.msk.bf16.mxu1 %vm3715_vm12, %v3891_v13  ;;  %vm3074_vm12 = vmand %vm5773_vm15, %vm3010_vm0  ;;  %vm6239_vm15 = vcmask 1043456  }
 0x312   : > { %vm3721_vm11 = vmpackc.low %vm3076_vm13, %vm3074_vm12 }
 0x313   : > { %vm6240_vm8 = vmmov %vm6239_vm15 }
 0x314   : > { %3198 = vmatpush1.bf16.msra.mxu1 %v3890_v1  ;;  %vm6241_vm5 = vmmov %vm6240_vm8 }
 0x315   : > { %3718 = vmatprep.subr.msk.bf16.mxu1 %vm3717_vm1, %v3891_v13  ;;  %v2554_v6 = vsel %vm6241_vm5, %v2540_v54, 0  ;;  %vm6242_vm10 = vmmov %vm6241_vm5  ;;  %vm2616_vm1 = vcmp.eq.s32.totalorder %v3987_v8, %v2610_v10  ;;  %vm2626_vm5 = vcmp.eq.s32.totalorder %v4023_v15, %v2610_v10 }
 0x316   : > { %vm2680_vm0 = vmand %vm5192_vm3, %vm2616_vm1 }
 0x317   : > { %vm2682_vm7 = vmand %vm5192_vm3, %vm2618_vm9  ;;  %vm2630_vm9 = vcmp.eq.s32.totalorder %v4038_v17, %v2610_v10  ;;  %v3280_v17 = vld [vmem:[%s6094_s2] sm:$0xff] }
 0x318   : > { %3200 = vmatpush1.bf16.msra.mxu1 %v3890_v1  ;;  %vm6244_vm12 = vmmov %vm6243_vm14  ;;  %3284 = vperm.xlu0 %3814, %v3280_v17  }
 0x319   : > { %3720 = vmatprep.subr.msk.bf16.mxu1 %vm3719_vm4, %v3891_v13  ;;  %vm2622_vm4 = vcmp.eq.s32.totalorder %v4009_v12, %v2610_v10  ;;  %vm3655_vm13 = vmpackc.low %vm2682_vm7, %vm2680_vm0 }
 0x31a   : > { %vm2690_vm0 = vmand %vm5192_vm3, %vm2626_vm5  ;;  %vm2638_vm5 = vcmp.eq.s32.totalorder %v4090_v26, %v2610_v10 }
 0x31c   : > { %3202 = vmatpush1.bf16.msra.mxu1 %v3890_v1 }
 0x31d   : > { %3722 = vmatprep.subr.msk.bf16.mxu1 %vm3721_vm11, %v3891_v13  ;;  %vm2684_vm11 = vmand %vm5192_vm3, %vm2620_vm2 }
 0x31e   : > { %vm2694_vm2 = vmand %vm5192_vm3, %vm2630_vm9  ;;  %vm2640_vm9 = vcmp.eq.s32.totalorder %v4120_v31, %v2610_v10 }
 0x320   : > { %3204 = vmatpush1.bf16.msra.mxu1 %v3890_v1 }
 0x323   : > { %3206 = vmatmul.mubr.bf16.vlgmr.msra.gmra.mrb[16].mxu1 %v4375_v0 }
 0x3c6   : > { %v2188_v29 = vpop.f32.mrb[12].mxu0 }
 0x3c7   : > { %v2195_v33 = vpack.c.bf16 %v2188_v29, %v2188_v29  ;;  %v2190_v38 = vpop.f32.mrb[13].mxu0 }
 0x3c8   : > { %v2196_v52 = vpack.c.bf16 %v2190_v38, %v2190_v38  ;;  %v2192_v53 = vpop.f32.mrb[14].mxu0 }
 0x3c9   : > { %v2209_v56 = vsel %vm6239_vm15, %v2195_v33, 0  ;;  %v2193_v7 = vpop.f32.mrb[15].mxu0  ;;  %vm2686_vm15 = vmand %vm5192_vm3, %vm2622_vm4 }
 0x3ca   : > { %3612 = vmatprep.subr.msk.bf16.mxu0 %vm6240_vm8, %v2196_v52  ;;  %vm2624_vm8 = vcmp.eq.s32.totalorder %v4015_v14, %v2610_v10  ;;  %v2611_v14 = vadd.s32 16, %v4041_v18  ;;  %v3281_v18 = vld [vmem:[%s6094_s2 + $0x8] sm:$0xff] }
 0x3cb   : > { %2215 = vmatpush1.bf16.msra.mxu0 %v2209_v56  ;;  %vm2688_vm1 = vmand %vm5192_vm3, %vm2624_vm8  ;;  %3289 = vperm.xlu0 %3814, %v3281_v18  }
 0x3cc   : > { %3653 = vmatprep.subr.msk.bf16.mxu0 %vm6242_vm10, %v2541_v55  ;;  %vm3657_vm10 = vmpackc.low %vm2686_vm15, %vm2684_vm11  ;;  %vm2636_vm15 = vcmp.eq.s32.totalorder %v4079_v24, %v2610_v10 }
 0x3cd   : > { %vm3659_vm4 = vmpackc.low %vm2690_vm0, %vm2688_vm1 }
 0x3ce   : > { %3613 = vmatmul.mubr.msk.bf16.vlgmr.msra.gmra.mrb[4].mxu0 %vm6243_vm14, %v3822_v25  ;;  %vm2628_vm14 = vcmp.eq.s32.totalorder %v4030_v16, %v2610_v10  ;;  %vm5915_vm1 = vmand %vm5192_vm3, %vm2638_vm5  ;;  %vm2649_vm5 = vcmp.eq.s32.totalorder %v4181_v40, %v2611_v14 }
 0x3cf   : > { %2560 = vmatpush1.bf16.msra.mxu0 %v2554_v6  ;;  %2591 = vmatprep.mubr.bf16.mxu0 %v3895_v36  ;;  %vm5883_vm7 = vmand %vm5192_vm3, %vm2628_vm14 }
 0x3d0   : > { %2836 = vmatprep.subr.bf16.mxu0 %v3890_v1  ;;  %vm3661_vm11 = vmpackc.low %vm2694_vm2, %vm5883_vm7  ;;  %vm2642_vm7 = vcmp.eq.s32.totalorder %v4135_v34, %v2610_v10 }
 0x3d1   : > { %vm5909_vm14 = vmand %vm5192_vm3, %vm2636_vm15 }
 0x3d2   : > { %vm3665_vm2 = vmpackc.low %vm5915_vm1, %vm5909_vm14  ;;  %vm2651_vm14 = vcmp.eq.s32.totalorder %v4186_v41, %v2611_v14 }
 0x3da   : > { %3654 = vmatmul.mubr.msk.bf16.vlgmr.msra.gmra.mrb[4].mxu0 %vm6244_vm12, %v3823_v20  ;;  %vm2632_vm12 = vcmp.eq.s32.totalorder %v4052_v19, %v2610_v10 }
 0x3db   : > { %2837 = vmatpush1.bf16.msra.mxu0 %v3890_v1  ;;  %2868 = vmatprep.mubr.bf16.mxu0 %v4094_v27  ;;  %vm5899_vm8 = vmand %vm5192_vm3, %vm2632_vm12 }
 0x3dc   : > { %2838 = vmatprep.subr.bf16.mxu0 %v3890_v1  ;;  %vm5932_vm12 = vmand %vm5192_vm3, %vm2640_vm9 }
 0x3dd   : > { %vm2713_vm9 = vmand %vm6236_vm6, %vm2649_vm5 }
 0x3df   : > { %3656 = vmatpush1.bf16.msk.msra.mxu0 %vm3655_vm13, %v3891_v13  ;;  %vm2634_vm13 = vcmp.eq.s32.totalorder %v4063_v21, %v2610_v10 }
 0x3e0   : > { %2840 = vmatprep.subr.bf16.mxu0 %v3890_v1 }
 0x3e3   : > { %3658 = vmatpush1.bf16.msk.msra.mxu0 %vm3657_vm10, %v3891_v13  ;;  %vm2698_vm10 = vmand %vm5192_vm3, %vm2634_vm13  ;;  %vm2646_vm13 = vcmp.eq.s32.totalorder %v4172_v39, %v2610_v10 }
 0x3e4   : > { %2842 = vmatprep.subr.bf16.mxu0 %v3890_v1  ;;  %vm3663_vm0 = vmpackc.low %vm2698_vm10, %vm5899_vm8 }
 0x3e5   : > { %vm5950_vm8 = vmand %vm5192_vm3, %vm2646_vm13  ;;  %vm2657_vm13 = vcmp.eq.s32.totalorder %v4207_v44, %v2611_v14  ;;  %v3825_v44 = vld [vmem:[%s6093_s1 + $0x40] sm:$0xff]  }
 0x3e7   : > { %3660 = vmatpush1.bf16.msk.msra.mxu0 %vm3659_vm4, %v3891_v13  ;;  %vm2644_vm4 = vcmp.eq.s32.totalorder %v4165_v37, %v2610_v10 }
 0x3e8   : > { %2844 = vmatprep.subr.bf16.mxu0 %v3890_v1  ;;  %vm5944_vm15 = vmand %vm5192_vm3, %vm2644_vm4 }
 0x3e9   : > { %vm3669_vm1 = vmpackc.low %vm5950_vm8, %vm5944_vm15 }
 0x3ea   : > { %vm2721_vm8 = vmand %vm6236_vm6, %vm2657_vm13  ;;  %vm2669_vm13 = vcmp.eq.s32.totalorder %v4326_v60, %v2611_v14 }
 0x3eb   : > { %3662 = vmatpush1.bf16.msk.msra.mxu0 %vm3661_vm11, %v3891_v13  ;;  %vm2706_vm11 = vmand %vm5192_vm3, %vm2642_vm7  ;;  %vm2653_vm3 = vcmp.eq.s32.totalorder %v4192_v42, %v2611_v14  ;;  %v3824_v42 = vld [vmem:[%s6093_s1 + $0x38] sm:$0xff]  }
 0x3ec   : > { %2846 = vmatprep.subr.bf16.mxu0 %v3890_v1  ;;  %vm3667_vm10 = vmpackc.low %vm2706_vm11, %vm5932_vm12  ;;  %vm2659_vm11 = vcmp.eq.s32.totalorder %v4219_v46, %v2611_v14  ;;  %v3285_v46 = vpop.permute.xlu0 %3284 }
 0x3ed   : > { %vm2715_vm7 = vmand %vm6236_vm6, %vm2651_vm14  ;;  %vm2663_vm14 = vcmp.eq.s32.totalorder %v4241_v50, %v2611_v14 }
 0x3ee   : > { %vm3671_vm12 = vmpackc.low %vm2715_vm7, %vm2713_vm9 }
 0x3ef   : > { %3664 = vmatpush1.bf16.msk.msra.mxu0 %vm3663_vm0, %v3891_v13  ;;  %vm2655_vm0 = vcmp.eq.s32.totalorder %v4200_v43, %v2611_v14  ;;  %vm2723_vm5 = vmand %vm6236_vm6, %vm2659_vm11  ;;  %vm2671_vm11 = vcmp.eq.s32.totalorder %v4333_v61, %v2611_v14 }
 0x3f0   : > { %2848 = vmatprep.subr.bf16.mxu0 %v3890_v1  ;;  %vm2719_vm4 = vmand %vm6236_vm6, %vm2655_vm0  ;;  %vm2667_vm0 = vcmp.eq.s32.totalorder %v4313_v59, %v2611_v14 }
 0x3f1   : > { %vm2727_vm7 = vmand %vm6236_vm6, %vm2663_vm14  ;;  %vm2675_vm14 = vcmp.eq.s32.totalorder %v4881_v63, %v2611_v14 }
 0x3f3   : > { %3666 = vmatpush1.bf16.msk.msra.mxu0 %vm3665_vm2, %v3891_v13  ;;  %vm2717_vm2 = vmand %vm6236_vm6, %vm2653_vm3 }
 0x3f4   : > { %2850 = vmatprep.subr.bf16.mxu0 %v3890_v1  ;;  %vm3673_vm15 = vmpackc.low %vm2719_vm4, %vm2717_vm2 }
 0x3f5   : > { %vm3675_vm3 = vmpackc.low %vm2723_vm5, %vm2721_vm8 }
 0x3f6   : > { %vm2731_vm4 = vmand %vm6236_vm6, %vm2667_vm0  ;;  %v3207_v19 = vpop.f32.mrb[16].mxu1 }
 0x3f7   : > { %3668 = vmatpush1.bf16.msk.msra.mxu0 %vm3667_vm10, %v3891_v13  ;;  %vm2661_vm10 = vcmp.eq.s32.totalorder %v4230_v48, %v2611_v14  ;;  %vm2733_vm8 = vmand %vm6236_vm6, %vm2669_vm13  ;;  %v3209_v21 = vpop.f32.mrb[17].mxu1  ;;  %v3214_v37 = vpack.c.bf16 %v3207_v19, %v3207_v19 }
 0x3f8   : > { %2852 = vmatprep.subr.bf16.mxu0 %v3890_v1  ;;  %vm2725_vm9 = vmand %vm6236_vm6, %vm2661_vm10  ;;  %vm2673_vm10 = vcmp.eq.s32.totalorder %v4687_v35, %v2611_v14  ;;  %v3211_v24 = vpop.f32.mrb[18].mxu1  ;;  %v3215_v39 = vpack.c.bf16 %v3209_v21, %v3209_v21 }
 0x3f9   : > { %vm2735_vm5 = vmand %vm6236_vm6, %vm2671_vm11 }
 0x3fb   : > { %3670 = vmatpush1.bf16.msk.msra.mxu0 %vm3669_vm1, %v3891_v13  ;;  %vm2665_vm1 = vcmp.eq.s32.totalorder %v4308_v57, %v2611_v14 }
 0x3fc   : > { %3672 = vmatprep.subr.msk.bf16.mxu0 %vm3671_vm12, %v3891_v13  ;;  %vm2729_vm2 = vmand %vm6236_vm6, %vm2665_vm1 }
 0x3fd   : > { %vm3677_vm12 = vmpackc.low %vm2727_vm7, %vm2725_vm9 }
 0x3fe   : > { %vm2737_vm1 = vmand %vm6236_vm6, %vm2673_vm10 }
 0x3ff   : > { %2855 = vmatpush1.bf16.msra.mxu0 %v3890_v1  ;;  %vm2739_vm9 = vmand %vm6236_vm6, %vm2675_vm14  ;;  %vm6259_vm6 = vcmask 1043456  }
 0x400   : > { %3674 = vmatprep.subr.msk.bf16.mxu0 %vm3673_vm15, %v3891_v13  ;;  %vm3679_vm15 = vmpackc.low %vm2731_vm4, %vm2729_vm2 }
 0x401   : > { %vm3683_vm0 = vmpackc.low %vm2739_vm9, %vm2737_vm1 }
 0x402   : > { %vm6260_vm7 = vmmov %vm6259_vm6 }
 0x403   : > { %2857 = vmatpush1.bf16.msra.mxu0 %v3890_v1  ;;  %vm6261_vm2 = vmmov %vm6259_vm6 }
 0x404   : > { %3676 = vmatprep.subr.msk.bf16.mxu0 %vm3675_vm3, %v3891_v13  ;;  %vm3681_vm3 = vmpackc.low %vm2735_vm5, %vm2733_vm8  ;;  %v3228_v43 = vsel %vm6261_vm2, %v3214_v37, 0 }
 0x405   : > { %vm6262_vm4 = vmmov %vm6261_vm2 }
 0x407   : > { %2859 = vmatpush1.bf16.msra.mxu0 %v3890_v1 }
 0x408   : > { %3678 = vmatprep.subr.msk.bf16.mxu0 %vm3677_vm12, %v3891_v13  ;;  %vm6263_vm12 = vcmask 64512  }
 0x409   : > { %vm6264_vm13 = vmmov %vm6263_vm12 }
 0x40b   : > { %2861 = vmatpush1.bf16.msra.mxu0 %v3890_v1 }
 0x40c   : > { %3680 = vmatprep.subr.msk.bf16.mxu0 %vm3679_vm15, %v3891_v13 }
 0x40f   : > { %2863 = vmatpush1.bf16.msra.mxu0 %v3890_v1 }
 0x410   : > { %3682 = vmatprep.subr.msk.bf16.mxu0 %vm3681_vm3, %v3891_v13 }
 0x413   : > { %2865 = vmatpush1.bf16.msra.mxu0 %v3890_v1 }
 0x414   : > { %3684 = vmatprep.subr.msk.bf16.mxu0 %vm3683_vm0, %v3891_v13  ;;  %v3212_v13 = vpop.f32.mrb[19].mxu1 }
 0x417   : > { %2867 = vmatpush1.bf16.msra.mxu0 %v3890_v1 }
 0x41a   : > { %2869 = vmatmul.mubr.bf16.vlgmr.msra.gmra.mrb[16].mxu0 %v4375_v0 }
 0x41b   : > { %2928 = vmatprep.mubr.bf16.mxu0 %v3895_v36 }
 0x44a   : > { %v3290_v60 = vpop.permute.xlu0 %3289 }
 0x4ed   : > { %v2870_v26 = vpop.f32.mrb[16].mxu0 }
 0x4ee   : > { %v2877_v1 = vpack.c.bf16 %v2870_v26, %v2870_v26  ;;  %v2872_v27 = vpop.f32.mrb[17].mxu0 }
 0x4ef   : > { %v2878_v31 = vpack.c.bf16 %v2872_v27, %v2872_v27  ;;  %v2874_v34 = vpop.f32.mrb[18].mxu0 }
 0x4f0   : > { %v2891_v40 = vsel %vm6259_vm6, %v2877_v1, 0  ;;  %v2875_v41 = vpop.f32.mrb[19].mxu0 }
 0x4f1   : > { %3688 = vmatprep.subr.msk.bf16.mxu0 %vm6260_vm7, %v2878_v31 }
 0x4f2   : > { %2897 = vmatpush1.bf16.msra.mxu0 %v2891_v40 }
 0x4f3   : > { %3726 = vmatprep.subr.msk.bf16.mxu0 %vm6262_vm4, %v3215_v39 }
 0x4f5   : > { %3689 = vmatmul.mubr.msk.bf16.vlgmr.msra.gmra.mrb[4].mxu0 %vm6263_vm12, %v3824_v42 }
 0x4f6   : > { %3234 = vmatpush1.bf16.msra.mxu0 %v3228_v43  ;;  %3265 = vmatprep.mubr.bf16.mxu0 %v3895_v36 }
 0x501   : > { %3727 = vmatmul.mubr.msk.bf16.vlgmr.msra.gmra.mrb[4].mxu0 %vm6264_vm13, %v3825_v44 }
 0x5d4   : > { %v3267_v48 = vpop.f32.mrb[4].mxu0 }
 0x5d5   : > { %v3292_v50 = vadd.f32 %v3285_v46, %v3267_v48  ;;  %v3269_v57 = vpop.f32.mrb[5].mxu0 }
 0x5d6   : > { %v3293_v59 = vadd.f32 %v3285_v46, %v3269_v57  ;;  %v3271_v61 = vpop.f32.mrb[6].mxu0 }
 0x5d7   : > { %3296 = vst [vmem:[%s163_s8] sm:$0xff] %v3292_v50  ;;  %v3294_v0 = vadd.f32 %v3290_v60, %v3271_v61  ;;  %v3273_v35 = vpop.f32.mrb[7].mxu0 }
 0x5d8   : > { %3297 = vst [vmem:[%s163_s8 + $0x8] sm:$0xff] %v3293_v59  ;;  %v3295_v36 = vadd.f32 %v3290_v60, %v3273_v35 }
 0x5d9   : > { %3298 = vst [vmem:[%s163_s8 + $0x10] sm:$0xff] %v3294_v0 }
 0x5da   : > { %3299 = vst [vmem:[%s163_s8 + $0x18] sm:$0xff] %v3295_v36 }
 0x5db   : > { %3839 = shalt.err (!%p3836_p3)
}
 0x5dc   : > { %s3840_s27 = scalar_lea.hbm %s6049_s19, 512  ;;  %s3844_s30 = scalar_lea.hbm %s6095_s3, 1024 }
 0x5dd   : > { %p3841_p4 = scmp.ne.s32.totalorder %s6049_s19, %s3840_s27  ;;  %p3845_p9 = scmp.lt.u32.totalorder %s6049_s19, %s6095_s3 }
 0x5de   : > { %p3846_p10 = scmp.lt.u32.totalorder %s3844_s30, %s3840_s27  ;;  %p3848_p12 = scmp.lt.u32.totalorder %s3840_s27, %s6049_s19 }
 0x5df   : > { %p3842_p7 = pnand %p3841_p4, %p3957_p5 }
 0x5e0   : > { %p3847_p11 = por %p3846_p10, %p3845_p9 }
 0x5e1   : > { %p3843_p8 = pneg %p3842_p7 }
 0x5e2   : > { %p3849_p13 = por %p3848_p12, %p3847_p11 }
 0x5e4   : > { %p3850_p0 = pnand %p3849_p13, %p3843_p8 }
 0x5e6   : > { %3853 = shalt.err (!%p3850_p0)
}
 0x5e7   : > { %s3897_s6 = smov 256   ;;  %s3898_s7 = smov 16  }
 0x5e8   : > { %3767 = dma.vmem_to_hbm [thread:$0]  (%p3957_p5), %s6044_s9, 512, %s6049_s19, %s6051_s16, %s3897_s6, %s3897_s6, %s3898_s7  }
 0x5e9 PF: > { %p3773_p1 = scmp.ge.s32.totalorder %s3888_s15, 2  ;;  %s3329_s8 = sand.u32 1, %s3876_s12  }
 0x5ea   : > { %s3330_s10 = scalar_lea.sflag [#allocation3], %s3329_s8 }
 0x5eb   : > { %p3770_p2 = pnand %p3773_p1, %p3961_p6 }
 0x5ed   : > { %3871 = dma.done.wait (!%p3770_p2), %s3330_s10, 512  }
 0x5ee   : > { %3873 = vsyncadd (!%p3770_p2), %s3330_s10, 4294966784  ;;  %p13_p3 = scmp.ge.s32.totalorder %s3944_s18, 4   ;;  %s6265_s12 = smov %s3880_s13 }
 0x5ef   : > { %s6266_s13 = smov %s3884_s14  ;;  %s6267_s14 = smov %s3955_s21 }
 0x5f0   : > { %s6268_s15 = smov %s3944_s18  ;;  %15 = sbr.rel (!%p13_p3) target bundleno = 3 (0x3), region = 75 }
 0x5f7   :  { %3335 = vsyncpa [#allocation3], 1 }
 0x5f8   :  { %3337 = vsyncpa [#allocation3 + $0x1], 1 }

</bundles_post_ra>
